<compile_context>
chip_gen: v7x
topology: tpu7x:2x2x1
jax: 0.10.0
libtpu: 0.0.40
codegen_flags: <defaults>
</compile_context>

<pallas_src>
import jax
import jax.numpy as jnp
from jax.experimental import pallas as pl
from jax.experimental.pallas import tpu as pltpu


def _rnd16(n):
    return ((n + 15) // 16) * 16


def make_rdb_kernel(H, W, G0, G, C, B_TILE):
    HW = H * W
    L = B_TILE * HW

    # Channel blocks that feed a 3x3 conv: block 0 = x (G0 ch), blocks 1..C-1 =
    # outputs of conv layers 0..C-2 (G ch each).  Block C (last conv output)
    # only feeds the 1x1 LFF, so it never enters the patch.
    blk_sizes = [G0] + [G] * (C - 1)
    blk_pad = [_rnd16(9 * nb) for nb in blk_sizes]          # K rows per block (padded)
    blk_off = [sum(blk_pad[:i]) for i in range(len(blk_pad))]
    K_total = sum(blk_pad)

    # 3x3 tap shifts on the flattened (batch-tile x HW) lane axis.  For valid
    # (h+dy, w+dx) the shifted source stays inside the same sample segment;
    # invalid positions are zeroed by the precomputed masks.
    tap_shift = []
    for t in range(9):
        dy, dx = t // 3 - 1, t % 3 - 1
        tap_shift.append((dy, dx, (-(dy * W + dx)) % L))

    def kernel(x_ref, mask_ref, *args):
        conv_w = args[0:C]                                   # (G, K_c) bf16 each
        (conv_b_ref, w_lff_ref, gate1_ref, gate2_ref,
         o_ref, patch_ref) = args[C:]

        Cfull = G0 + C * G
        Gq = gate1_ref.shape[0]

        x = x_ref[0]                                         # (G0, L) f32

        # ---- per-sample pooled means, accumulated incrementally in f32 ----
        pooled = [[] for _ in range(B_TILE)]

        def pool(block_f32):
            for t in range(B_TILE):
                pooled[t].append(
                    jnp.mean(block_f32[:, t * HW:(t + 1) * HW], axis=1, keepdims=True))

        # ---- incremental im2col: roll/mask each channel block exactly once ----
        def write_taps(block_f32, block_bf, b):
            nb = blk_sizes[b]
            taps = []
            for t, (dy, dx, shift) in enumerate(tap_shift):
                if dy == 0 and dx == 0:
                    taps.append(block_bf)                    # center tap = block itself
                else:
                    rolled = pltpu.roll(block_f32, shift, 1)          # XLU lane rotate
                    taps.append((rolled * mask_ref[t:t + 1, :]).astype(jnp.bfloat16))
            pad = blk_pad[b] - 9 * nb
            if pad:
                taps.append(jnp.zeros((pad, L), jnp.bfloat16))
            # single sublane-aligned (multiple-of-16 rows) bf16 store
            patch_ref[blk_off[b]:blk_off[b] + blk_pad[b], :] = jnp.concatenate(taps, axis=0)

        blocks_bf = []

        # block 0 = input x
        pool(x)
        x_bf = x.astype(jnp.bfloat16)
        blocks_bf.append(x_bf)
        write_taps(x, x_bf, 0)

        # ---- dense block: C x (3x3 conv + ReLU) ----
        K_c = blk_pad[0]
        for c in range(C):
            acc = jnp.dot(conv_w[c][...], patch_ref[0:K_c, :],       # (G, L) f32
                          preferred_element_type=jnp.float32)
            acc = jnp.maximum(acc + conv_b_ref[:, c:c + 1], 0.0)
            pool(acc)
            new_bf = acc.astype(jnp.bfloat16)
            blocks_bf.append(new_bf)
            if c + 1 < C:                                    # last block never feeds a 3x3 conv
                write_taps(acc, new_bf, c + 1)
                K_c += blk_pad[c + 1]

        # ---- 1x1 LFF conv (issue the big matmul before the tiny gate MLP) ----
        feat_bf = jnp.concatenate(blocks_bf, axis=0)         # (Cfull, L) bf16
        conv1 = jnp.dot(w_lff_ref[...], feat_bf,
                        preferred_element_type=jnp.float32)  # (G0, L) f32, lane-dense

        # ---- adaptive gate: pooled means -> MLP -> sigmoid (per sample) ----
        y_mat = jnp.concatenate(
            [jnp.concatenate(pooled[t], axis=0) for t in range(B_TILE)], axis=1)  # (Cfull, B_TILE)
        w1m = gate1_ref[:, 0:Cfull]                          # (Gq, Cfull)
        b1e = gate1_ref[:, Cfull:Cfull + 1]                  # (Gq, 1) = b1 + s*w1[Cfull]
        h1 = jnp.maximum(
            jnp.dot(w1m, y_mat, preferred_element_type=jnp.float32) + b1e, 0.0)
        w2 = gate2_ref[:, 0:Gq]                              # (G0, Gq)
        b2 = gate2_ref[:, Gq:Gq + 1]                         # (G0, 1)
        b_lff = gate2_ref[:, Gq + 1:Gq + 2]                  # (G0, 1)
        adw = jax.nn.sigmoid(
            jnp.dot(w2, h1, preferred_element_type=jnp.float32) + b2)   # (G0, B_TILE)

        # ---- gated 1x1 conv + bias + residual (per-sample gate columns) ----
        gated = jnp.concatenate(
            [conv1[:, t * HW:(t + 1) * HW] * adw[:, t:t + 1] for t in range(B_TILE)],
            axis=1)                                          # (G0, L)
        o_ref[0] = gated + b_lff + x

    return kernel, K_total


def rdb_forward(x_nchw, s, params, b_tile=2):
    B, G0, H, W = x_nchw.shape
    C = len(params["conv_w"])
    G = params["conv_w"][0].shape[-1]
    Cfull = G0 + C * G
    HW = H * W

    # Pick a batch tile that divides B; prefer the requested tile but keep the
    # grid at >= 2 steps when possible (v7x has 2 TensorCores per chip).
    divisors = [d for d in range(1, B + 1) if B % d == 0 and d <= max(1, b_tile)]
    bt = max(divisors)
    if B // bt < 2:
        two_step = [d for d in divisors if B // d >= 2]
        if two_step:
            bt = max(two_step)
    n_steps = B // bt
    L = bt * HW

    # ---- host-side parameter packing / transposition (tiny one-off XLA ops) ----
    # Conv weights: K ordered (channel-block, tap, channel), each block's K
    # group zero-padded to a multiple of 16 to match the bf16 patch layout.
    conv_w_mat, conv_b_cols = [], []
    for c, (w, b) in enumerate(zip(params["conv_w"], params["conv_b"])):
        cols, start = [], 0
        for nb in [G0] + [G] * c:
            wb = w[:, :, start:start + nb, :].reshape(9 * nb, G)     # (tap-major, ch-minor)
            pad = (-(9 * nb)) % 16
            if pad:
                wb = jnp.concatenate([wb, jnp.zeros((pad, G), wb.dtype)], axis=0)
            cols.append(wb)
            start += nb
        conv_w_mat.append(jnp.transpose(jnp.concatenate(cols, axis=0)).astype(jnp.bfloat16))
        conv_b_cols.append(jnp.transpose(b))                 # (G, 1)
    conv_b_pack = jnp.concatenate(conv_b_cols, axis=1).astype(jnp.float32)   # (G, C)

    w_lfft = jnp.transpose(params["w_lff"]).astype(jnp.bfloat16)             # (G0, Cfull)

    s_val = jnp.asarray(s, jnp.float32)
    w1 = params["w1"]                                                        # (Cfull+1, Gq)
    b1_eff = params["b1"] + s_val * w1[Cfull:Cfull + 1, :]                   # s folded into bias
    gate1 = jnp.concatenate([jnp.transpose(w1[:Cfull, :]),
                             jnp.transpose(b1_eff)], axis=1).astype(jnp.float32)   # (Gq, Cfull+1)
    gate2 = jnp.concatenate([jnp.transpose(params["w2"]),
                             jnp.transpose(params["b2"]),
                             jnp.transpose(params["b_lff"])], axis=1).astype(jnp.float32)  # (G0, Gq+2)

    # Precomputed 3x3 boundary masks on the merged (batch-tile x HW) lane axis.
    p = jnp.arange(HW)
    hh, ww = p // W, p % W
    mask_rows = []
    for t in range(9):
        dy, dx = t // 3 - 1, t % 3 - 1
        m = ((hh + dy >= 0) & (hh + dy < H) & (ww + dx >= 0) & (ww + dx < W))
        mask_rows.append(jnp.tile(m, bt))
    masks = jnp.stack(mask_rows, axis=0).astype(jnp.float32)                 # (9, L)

    # NCHW -> (steps, channels, batch-tile x H*W): channels on sublanes,
    # batch-tile/pixels merged on lanes (lane-dense matmul N and stores).
    x_cp = (x_nchw.reshape(n_steps, bt, G0, HW)
            .transpose(0, 2, 1, 3)
            .reshape(n_steps, G0, L)
            .astype(jnp.float32))

    kernel, K_total = make_rdb_kernel(H, W, G0, G, C, bt)

    def full_spec(arr):
        n = arr.ndim
        return pl.BlockSpec(arr.shape, lambda g, _n=n: (0,) * _n)

    in_specs = ([pl.BlockSpec((1, G0, L), lambda g: (g, 0, 0)), full_spec(masks)]
                + [full_spec(w) for w in conv_w_mat]
                + [full_spec(conv_b_pack), full_spec(w_lfft),
                   full_spec(gate1), full_spec(gate2)])

    out = pl.pallas_call(
        kernel,
        out_shape=jax.ShapeDtypeStruct((n_steps, G0, L), jnp.float32),
        grid_spec=pltpu.PrefetchScalarGridSpec(
            num_scalar_prefetch=0,
            grid=(n_steps,),
            in_specs=in_specs,
            out_specs=pl.BlockSpec((1, G0, L), lambda g: (g, 0, 0)),
            scratch_shapes=[pltpu.VMEM((K_total, L), jnp.bfloat16)],
        ),
        compiler_params=pltpu.CompilerParams(
            dimension_semantics=("parallel",)),
    )(x_cp, masks, *conv_w_mat, conv_b_pack, w_lfft, gate1, gate2)

    return (out.reshape(n_steps, G0, bt, HW)
               .transpose(0, 2, 1, 3)
               .reshape(B, G0, H, W))


def init_params(key, G0, G, C):
    Cfull = G0 + C * G
    keys = jax.random.split(key, 2 * C + 6)
    ki = 0
    conv_w, conv_b = [], []
    cin = G0
    for _ in range(C):
        conv_w.append(0.1 * jax.random.normal(keys[ki], (3, 3, cin, G), jnp.float32)); ki += 1
        conv_b.append(0.1 * jax.random.normal(keys[ki], (1, G), jnp.float32)); ki += 1
        cin += G
    params = {
        "conv_w": conv_w,
        "conv_b": conv_b,
        "w_lff": 0.1 * jax.random.normal(keys[ki + 0], (Cfull, G0), jnp.float32),
        "b_lff": 0.1 * jax.random.normal(keys[ki + 1], (1, G0), jnp.float32),
        "w1": 0.1 * jax.random.normal(keys[ki + 2], (Cfull + 1, G0 // 4), jnp.float32),
        "b1": 0.1 * jax.random.normal(keys[ki + 3], (1, G0 // 4), jnp.float32),
        "w2": 0.1 * jax.random.normal(keys[ki + 4], (G0 // 4, G0), jnp.float32),
        "b2": 0.1 * jax.random.normal(keys[ki + 5], (1, G0), jnp.float32),
    }
    return params


def rdb_reference(x_nchw, s, params):
    """Pure-JAX reference (mirrors the PyTorch forward) for validation."""
    x = jnp.transpose(x_nchw, (0, 2, 3, 1)).astype(jnp.float32)
    feat = x
    for w, b in zip(params["conv_w"], params["conv_b"]):
        out = jax.lax.conv_general_dilated(
            feat, w, window_strides=(1, 1), padding="SAME",
            dimension_numbers=("NHWC", "HWIO", "NHWC"),
            precision=jax.lax.Precision.HIGHEST)
        out = jnp.maximum(out + b.reshape(1, 1, 1, -1), 0.0)
        feat = jnp.concatenate([feat, out], axis=-1)
    Cfull = feat.shape[-1]
    y = jnp.mean(feat, axis=(1, 2))
    sv = jnp.float32(s)
    h1 = jnp.maximum(y @ params["w1"][:Cfull] + sv * params["w1"][Cfull:] + params["b1"], 0.0)
    adw = jax.nn.sigmoid(h1 @ params["w2"] + params["b2"])
    conv1 = jnp.einsum("bhwc,co->bhwo", feat, params["w_lff"],
                       precision=jax.lax.Precision.HIGHEST)
    out = conv1 * adw[:, None, None, :] + params["b_lff"].reshape(1, 1, 1, -1) + x
    return jnp.transpose(out, (0, 3, 1, 2))


if __name__ == "__main__":
    key = jax.random.PRNGKey(0)
    kx, kp = jax.random.split(key)

    # RDB(growRate0=8, growRate=8, nConvLayers=3), input (B=4, C=8, 16, 16)
    # B=4 with B_TILE=2 -> 2 "parallel" grid steps, 2 samples per step on lanes.
    B, G0, G, C, Hs, Ws = 4, 8, 8, 3, 16, 16
    x = jax.random.normal(kx, (B, G0, Hs, Ws), jnp.float32)
    s = 2.0
    params = init_params(kp, G0, G, C)

    out = jax.block_until_ready(rdb_forward(x, s, params, b_tile=2))
    assert out.shape == (B, G0, Hs, Ws)

    ref = jax.block_until_ready(rdb_reference(x, s, params))
    max_err = float(jnp.max(jnp.abs(out - ref)))
    # bf16 matmul inputs (f32 accumulation) vs HIGHEST-precision f32 reference.
    assert max_err < 5e-2, f"max abs err {max_err}"

    print("KERNEL_OK")
</pallas_src>

<mosaic_0001>
module attributes {stable_mosaic.version = 11 : i64} {
  func.func @kernel(%arg0: i32, %arg1: memref<1x8x512xf32, #tpu.memory_space<vmem>>, %arg2: memref<9x512xf32, #tpu.memory_space<vmem>>, %arg3: memref<8x80xbf16, #tpu.memory_space<vmem>>, %arg4: memref<8x160xbf16, #tpu.memory_space<vmem>>, %arg5: memref<8x240xbf16, #tpu.memory_space<vmem>>, %arg6: memref<8x3xf32, #tpu.memory_space<vmem>>, %arg7: memref<8x32xbf16, #tpu.memory_space<vmem>>, %arg8: memref<2x33xf32, #tpu.memory_space<vmem>>, %arg9: memref<8x4xf32, #tpu.memory_space<vmem>>, %arg10: memref<1x8x512xf32, #tpu.memory_space<vmem>>, %arg11: memref<240x512xbf16, #tpu.memory_space<vmem>>) attributes {dimension_semantics = [#tpu.dimension_semantics<parallel>], iteration_bounds = array<i64: 2>, scalar_prefetch = 0 : i64, scratch_operands = 1 : i64, tpu.core_type = #tpu.core_type<tc>, window_params = [{transform_indices = @transform_0, window_bounds = array<i64: 1, 8, 512>}, {pipeline_mode = #tpu.pipeline_mode<synchronous>, transform_indices = @transform_1, window_bounds = array<i64: 9, 512>}, {pipeline_mode = #tpu.pipeline_mode<synchronous>, transform_indices = @transform_2, window_bounds = array<i64: 8, 80>}, {pipeline_mode = #tpu.pipeline_mode<synchronous>, transform_indices = @transform_3, window_bounds = array<i64: 8, 160>}, {pipeline_mode = #tpu.pipeline_mode<synchronous>, transform_indices = @transform_4, window_bounds = array<i64: 8, 240>}, {pipeline_mode = #tpu.pipeline_mode<synchronous>, transform_indices = @transform_5, window_bounds = array<i64: 8, 3>}, {pipeline_mode = #tpu.pipeline_mode<synchronous>, transform_indices = @transform_6, window_bounds = array<i64: 8, 32>}, {pipeline_mode = #tpu.pipeline_mode<synchronous>, transform_indices = @transform_7, window_bounds = array<i64: 2, 33>}, {pipeline_mode = #tpu.pipeline_mode<synchronous>, transform_indices = @transform_8, window_bounds = array<i64: 8, 4>}, {transform_indices = @transform_9, window_bounds = array<i64: 1, 8, 512>}]} {
    %c0 = arith.constant 0 : index
    %c0_0 = arith.constant 0 : index
    %c0_1 = arith.constant 0 : index
    %0 = vector.load %arg1[%c0, %c0_0, %c0_1] : memref<1x8x512xf32, #tpu.memory_space<vmem>>, vector<1x8x512xf32>
    %1 = vector.shape_cast %0 : vector<1x8x512xf32> to vector<8x512xf32>
    %2 = vector.extract_strided_slice %1 {offsets = [0, 0], sizes = [8, 256], strides = [1, 1]} : vector<8x512xf32> to vector<8x256xf32>
    %cst = arith.constant dense<0.000000e+00> : vector<8xf32>
    %3 = vector.multi_reduction <add>, %2, %cst [1] : vector<8x256xf32> to vector<8xf32>
    %4 = vector.shape_cast %3 : vector<8xf32> to vector<8x1xf32>
    %cst_2 = arith.constant 2.560000e+02 : f32
    %5 = vector.broadcast %cst_2 : f32 to vector<8x1xf32>
    %6 = arith.divf %4, %5 : vector<8x1xf32>
    %7 = vector.extract_strided_slice %1 {offsets = [0, 256], sizes = [8, 256], strides = [1, 1]} : vector<8x512xf32> to vector<8x256xf32>
    %cst_3 = arith.constant dense<0.000000e+00> : vector<8xf32>
    %8 = vector.multi_reduction <add>, %7, %cst_3 [1] : vector<8x256xf32> to vector<8xf32>
    %9 = vector.shape_cast %8 : vector<8xf32> to vector<8x1xf32>
    %cst_4 = arith.constant 2.560000e+02 : f32
    %10 = vector.broadcast %cst_4 : f32 to vector<8x1xf32>
    %11 = arith.divf %9, %10 : vector<8x1xf32>
    %12 = arith.truncf %1 : vector<8x512xf32> to vector<8x512xbf16>
    %c17_i32 = arith.constant 17 : i32
    %13 = tpu.dynamic_rotate %1 by %c17_i32 dim 1 : vector<8x512xf32>, i32 -> vector<8x512xf32>
    %c0_5 = arith.constant 0 : index
    %c0_6 = arith.constant 0 : index
    %14 = vector.load %arg2[%c0_5, %c0_6] : memref<9x512xf32, #tpu.memory_space<vmem>>, vector<1x512xf32>
    %15 = vector.broadcast %14 : vector<1x512xf32> to vector<8x512xf32>
    %16 = arith.mulf %13, %15 : vector<8x512xf32>
    %17 = arith.truncf %16 : vector<8x512xf32> to vector<8x512xbf16>
    %c16_i32 = arith.constant 16 : i32
    %18 = tpu.dynamic_rotate %1 by %c16_i32 dim 1 : vector<8x512xf32>, i32 -> vector<8x512xf32>
    %c1 = arith.constant 1 : index
    %c0_7 = arith.constant 0 : index
    %19 = vector.load %arg2[%c1, %c0_7] : memref<9x512xf32, #tpu.memory_space<vmem>>, vector<1x512xf32>
    %20 = vector.broadcast %19 : vector<1x512xf32> to vector<8x512xf32>
    %21 = arith.mulf %18, %20 : vector<8x512xf32>
    %22 = arith.truncf %21 : vector<8x512xf32> to vector<8x512xbf16>
    %c15_i32 = arith.constant 15 : i32
    %23 = tpu.dynamic_rotate %1 by %c15_i32 dim 1 : vector<8x512xf32>, i32 -> vector<8x512xf32>
    %c2 = arith.constant 2 : index
    %c0_8 = arith.constant 0 : index
    %24 = vector.load %arg2[%c2, %c0_8] : memref<9x512xf32, #tpu.memory_space<vmem>>, vector<1x512xf32>
    %25 = vector.broadcast %24 : vector<1x512xf32> to vector<8x512xf32>
    %26 = arith.mulf %23, %25 : vector<8x512xf32>
    %27 = arith.truncf %26 : vector<8x512xf32> to vector<8x512xbf16>
    %c1_i32 = arith.constant 1 : i32
    %28 = tpu.dynamic_rotate %1 by %c1_i32 dim 1 : vector<8x512xf32>, i32 -> vector<8x512xf32>
    %c3 = arith.constant 3 : index
    %c0_9 = arith.constant 0 : index
    %29 = vector.load %arg2[%c3, %c0_9] : memref<9x512xf32, #tpu.memory_space<vmem>>, vector<1x512xf32>
    %30 = vector.broadcast %29 : vector<1x512xf32> to vector<8x512xf32>
    %31 = arith.mulf %28, %30 : vector<8x512xf32>
    %32 = arith.truncf %31 : vector<8x512xf32> to vector<8x512xbf16>
    %c511_i32 = arith.constant 511 : i32
    %33 = tpu.dynamic_rotate %1 by %c511_i32 dim 1 : vector<8x512xf32>, i32 -> vector<8x512xf32>
    %c5 = arith.constant 5 : index
    %c0_10 = arith.constant 0 : index
    %34 = vector.load %arg2[%c5, %c0_10] : memref<9x512xf32, #tpu.memory_space<vmem>>, vector<1x512xf32>
    %35 = vector.broadcast %34 : vector<1x512xf32> to vector<8x512xf32>
    %36 = arith.mulf %33, %35 : vector<8x512xf32>
    %37 = arith.truncf %36 : vector<8x512xf32> to vector<8x512xbf16>
    %c497_i32 = arith.constant 497 : i32
    %38 = tpu.dynamic_rotate %1 by %c497_i32 dim 1 : vector<8x512xf32>, i32 -> vector<8x512xf32>
    %c6 = arith.constant 6 : index
    %c0_11 = arith.constant 0 : index
    %39 = vector.load %arg2[%c6, %c0_11] : memref<9x512xf32, #tpu.memory_space<vmem>>, vector<1x512xf32>
    %40 = vector.broadcast %39 : vector<1x512xf32> to vector<8x512xf32>
    %41 = arith.mulf %38, %40 : vector<8x512xf32>
    %42 = arith.truncf %41 : vector<8x512xf32> to vector<8x512xbf16>
    %c496_i32 = arith.constant 496 : i32
    %43 = tpu.dynamic_rotate %1 by %c496_i32 dim 1 : vector<8x512xf32>, i32 -> vector<8x512xf32>
    %c7 = arith.constant 7 : index
    %c0_12 = arith.constant 0 : index
    %44 = vector.load %arg2[%c7, %c0_12] : memref<9x512xf32, #tpu.memory_space<vmem>>, vector<1x512xf32>
    %45 = vector.broadcast %44 : vector<1x512xf32> to vector<8x512xf32>
    %46 = arith.mulf %43, %45 : vector<8x512xf32>
    %47 = arith.truncf %46 : vector<8x512xf32> to vector<8x512xbf16>
    %c495_i32 = arith.constant 495 : i32
    %48 = tpu.dynamic_rotate %1 by %c495_i32 dim 1 : vector<8x512xf32>, i32 -> vector<8x512xf32>
    %c8 = arith.constant 8 : index
    %c0_13 = arith.constant 0 : index
    %49 = vector.load %arg2[%c8, %c0_13] : memref<9x512xf32, #tpu.memory_space<vmem>>, vector<1x512xf32>
    %50 = vector.broadcast %49 : vector<1x512xf32> to vector<8x512xf32>
    %51 = arith.mulf %48, %50 : vector<8x512xf32>
    %52 = arith.truncf %51 : vector<8x512xf32> to vector<8x512xbf16>
    %cst_14 = arith.constant 0.000000e+00 : bf16
    %53 = vector.broadcast %cst_14 : bf16 to vector<8x512xbf16>
    %54 = tpu.concatenate %17, %22, %27, %32, %12, %37, %42, %47, %52, %53 in 0 : vector<8x512xbf16>, vector<8x512xbf16>, vector<8x512xbf16>, vector<8x512xbf16>, vector<8x512xbf16>, vector<8x512xbf16>, vector<8x512xbf16>, vector<8x512xbf16>, vector<8x512xbf16>, vector<8x512xbf16> -> vector<80x512xbf16>
    %c0_15 = arith.constant 0 : index
    %c0_16 = arith.constant 0 : index
    %55 = vector.load %arg11[%c0_15, %c0_16] : memref<240x512xbf16, #tpu.memory_space<vmem>>, vector<80x512xbf16>
    tpu.vector_store %arg11[%c0_15, %c0_16], %54 {strides = array<i32>} : memref<240x512xbf16, #tpu.memory_space<vmem>>, vector<80x512xbf16>,
    %c0_17 = arith.constant 0 : index
    %c0_18 = arith.constant 0 : index
    %56 = vector.load %arg3[%c0_17, %c0_18] : memref<8x80xbf16, #tpu.memory_space<vmem>>, vector<8x80xbf16>
    %c0_19 = arith.constant 0 : index
    %c0_20 = arith.constant 0 : index
    %57 = vector.load %arg11[%c0_19, %c0_20] : memref<240x512xbf16, #tpu.memory_space<vmem>>, vector<80x512xbf16>
    %cst_21 = arith.constant dense<0.000000e+00> : vector<8x512xf32>
    %58 = tpu.matmul %56, %57, %cst_21 {dimension_numbers = #tpu.dot_dimension_numbers<[1], [0], [0], [1], [0, 0, 1, 1], [], []>} : vector<8x80xbf16>, vector<80x512xbf16>, vector<8x512xf32> -> vector<8x512xf32>
    %c0_22 = arith.constant 0 : index
    %c0_23 = arith.constant 0 : index
    %59 = vector.load %arg6[%c0_22, %c0_23] : memref<8x3xf32, #tpu.memory_space<vmem>>, vector<8x1xf32>
    %60 = vector.broadcast %59 : vector<8x1xf32> to vector<8x512xf32>
    %61 = arith.addf %58, %60 : vector<8x512xf32>
    %cst_24 = arith.constant 0.000000e+00 : f32
    %62 = vector.broadcast %cst_24 : f32 to vector<8x512xf32>
    %63 = arith.maximumf %61, %62 : vector<8x512xf32>
    %64 = vector.extract_strided_slice %63 {offsets = [0, 0], sizes = [8, 256], strides = [1, 1]} : vector<8x512xf32> to vector<8x256xf32>
    %cst_25 = arith.constant dense<0.000000e+00> : vector<8xf32>
    %65 = vector.multi_reduction <add>, %64, %cst_25 [1] : vector<8x256xf32> to vector<8xf32>
    %66 = vector.shape_cast %65 : vector<8xf32> to vector<8x1xf32>
    %cst_26 = arith.constant 2.560000e+02 : f32
    %67 = vector.broadcast %cst_26 : f32 to vector<8x1xf32>
    %68 = arith.divf %66, %67 : vector<8x1xf32>
    %69 = vector.extract_strided_slice %63 {offsets = [0, 256], sizes = [8, 256], strides = [1, 1]} : vector<8x512xf32> to vector<8x256xf32>
    %cst_27 = arith.constant dense<0.000000e+00> : vector<8xf32>
    %70 = vector.multi_reduction <add>, %69, %cst_27 [1] : vector<8x256xf32> to vector<8xf32>
    %71 = vector.shape_cast %70 : vector<8xf32> to vector<8x1xf32>
    %cst_28 = arith.constant 2.560000e+02 : f32
    %72 = vector.broadcast %cst_28 : f32 to vector<8x1xf32>
    %73 = arith.divf %71, %72 : vector<8x1xf32>
    %74 = arith.truncf %63 : vector<8x512xf32> to vector<8x512xbf16>
    %c17_i32_29 = arith.constant 17 : i32
    %75 = tpu.dynamic_rotate %63 by %c17_i32_29 dim 1 : vector<8x512xf32>, i32 -> vector<8x512xf32>
    %c0_30 = arith.constant 0 : index
    %c0_31 = arith.constant 0 : index
    %76 = vector.load %arg2[%c0_30, %c0_31] : memref<9x512xf32, #tpu.memory_space<vmem>>, vector<1x512xf32>
    %77 = vector.broadcast %76 : vector<1x512xf32> to vector<8x512xf32>
    %78 = arith.mulf %75, %77 : vector<8x512xf32>
    %79 = arith.truncf %78 : vector<8x512xf32> to vector<8x512xbf16>
    %c16_i32_32 = arith.constant 16 : i32
    %80 = tpu.dynamic_rotate %63 by %c16_i32_32 dim 1 : vector<8x512xf32>, i32 -> vector<8x512xf32>
    %c1_33 = arith.constant 1 : index
    %c0_34 = arith.constant 0 : index
    %81 = vector.load %arg2[%c1_33, %c0_34] : memref<9x512xf32, #tpu.memory_space<vmem>>, vector<1x512xf32>
    %82 = vector.broadcast %81 : vector<1x512xf32> to vector<8x512xf32>
    %83 = arith.mulf %80, %82 : vector<8x512xf32>
    %84 = arith.truncf %83 : vector<8x512xf32> to vector<8x512xbf16>
    %c15_i32_35 = arith.constant 15 : i32
    %85 = tpu.dynamic_rotate %63 by %c15_i32_35 dim 1 : vector<8x512xf32>, i32 -> vector<8x512xf32>
    %c2_36 = arith.constant 2 : index
    %c0_37 = arith.constant 0 : index
    %86 = vector.load %arg2[%c2_36, %c0_37] : memref<9x512xf32, #tpu.memory_space<vmem>>, vector<1x512xf32>
    %87 = vector.broadcast %86 : vector<1x512xf32> to vector<8x512xf32>
    %88 = arith.mulf %85, %87 : vector<8x512xf32>
    %89 = arith.truncf %88 : vector<8x512xf32> to vector<8x512xbf16>
    %c1_i32_38 = arith.constant 1 : i32
    %90 = tpu.dynamic_rotate %63 by %c1_i32_38 dim 1 : vector<8x512xf32>, i32 -> vector<8x512xf32>
    %c3_39 = arith.constant 3 : index
    %c0_40 = arith.constant 0 : index
    %91 = vector.load %arg2[%c3_39, %c0_40] : memref<9x512xf32, #tpu.memory_space<vmem>>, vector<1x512xf32>
    %92 = vector.broadcast %91 : vector<1x512xf32> to vector<8x512xf32>
    %93 = arith.mulf %90, %92 : vector<8x512xf32>
    %94 = arith.truncf %93 : vector<8x512xf32> to vector<8x512xbf16>
    %c511_i32_41 = arith.constant 511 : i32
    %95 = tpu.dynamic_rotate %63 by %c511_i32_41 dim 1 : vector<8x512xf32>, i32 -> vector<8x512xf32>
    %c5_42 = arith.constant 5 : index
    %c0_43 = arith.constant 0 : index
    %96 = vector.load %arg2[%c5_42, %c0_43] : memref<9x512xf32, #tpu.memory_space<vmem>>, vector<1x512xf32>
    %97 = vector.broadcast %96 : vector<1x512xf32> to vector<8x512xf32>
    %98 = arith.mulf %95, %97 : vector<8x512xf32>
    %99 = arith.truncf %98 : vector<8x512xf32> to vector<8x512xbf16>
    %c497_i32_44 = arith.constant 497 : i32
    %100 = tpu.dynamic_rotate %63 by %c497_i32_44 dim 1 : vector<8x512xf32>, i32 -> vector<8x512xf32>
    %c6_45 = arith.constant 6 : index
    %c0_46 = arith.constant 0 : index
    %101 = vector.load %arg2[%c6_45, %c0_46] : memref<9x512xf32, #tpu.memory_space<vmem>>, vector<1x512xf32>
    %102 = vector.broadcast %101 : vector<1x512xf32> to vector<8x512xf32>
    %103 = arith.mulf %100, %102 : vector<8x512xf32>
    %104 = arith.truncf %103 : vector<8x512xf32> to vector<8x512xbf16>
    %c496_i32_47 = arith.constant 496 : i32
    %105 = tpu.dynamic_rotate %63 by %c496_i32_47 dim 1 : vector<8x512xf32>, i32 -> vector<8x512xf32>
    %c7_48 = arith.constant 7 : index
    %c0_49 = arith.constant 0 : index
    %106 = vector.load %arg2[%c7_48, %c0_49] : memref<9x512xf32, #tpu.memory_space<vmem>>, vector<1x512xf32>
    %107 = vector.broadcast %106 : vector<1x512xf32> to vector<8x512xf32>
    %108 = arith.mulf %105, %107 : vector<8x512xf32>
    %109 = arith.truncf %108 : vector<8x512xf32> to vector<8x512xbf16>
    %c495_i32_50 = arith.constant 495 : i32
    %110 = tpu.dynamic_rotate %63 by %c495_i32_50 dim 1 : vector<8x512xf32>, i32 -> vector<8x512xf32>
    %c8_51 = arith.constant 8 : index
    %c0_52 = arith.constant 0 : index
    %111 = vector.load %arg2[%c8_51, %c0_52] : memref<9x512xf32, #tpu.memory_space<vmem>>, vector<1x512xf32>
    %112 = vector.broadcast %111 : vector<1x512xf32> to vector<8x512xf32>
    %113 = arith.mulf %110, %112 : vector<8x512xf32>
    %114 = arith.truncf %113 : vector<8x512xf32> to vector<8x512xbf16>
    %cst_53 = arith.constant 0.000000e+00 : bf16
    %115 = vector.broadcast %cst_53 : bf16 to vector<8x512xbf16>
    %116 = tpu.concatenate %79, %84, %89, %94, %74, %99, %104, %109, %114, %115 in 0 : vector<8x512xbf16>, vector<8x512xbf16>, vector<8x512xbf16>, vector<8x512xbf16>, vector<8x512xbf16>, vector<8x512xbf16>, vector<8x512xbf16>, vector<8x512xbf16>, vector<8x512xbf16>, vector<8x512xbf16> -> vector<80x512xbf16>
    %c80 = arith.constant 80 : index
    %c0_54 = arith.constant 0 : index
    %117 = vector.load %arg11[%c80, %c0_54] : memref<240x512xbf16, #tpu.memory_space<vmem>>, vector<80x512xbf16>
    tpu.vector_store %arg11[%c80, %c0_54], %116 {strides = array<i32>} : memref<240x512xbf16, #tpu.memory_space<vmem>>, vector<80x512xbf16>,
    %c0_55 = arith.constant 0 : index
    %c0_56 = arith.constant 0 : index
    %118 = vector.load %arg4[%c0_55, %c0_56] : memref<8x160xbf16, #tpu.memory_space<vmem>>, vector<8x160xbf16>
    %c0_57 = arith.constant 0 : index
    %c0_58 = arith.constant 0 : index
    %119 = vector.load %arg11[%c0_57, %c0_58] : memref<240x512xbf16, #tpu.memory_space<vmem>>, vector<160x512xbf16>
    %cst_59 = arith.constant dense<0.000000e+00> : vector<8x512xf32>
    %120 = tpu.matmul %118, %119, %cst_59 {dimension_numbers = #tpu.dot_dimension_numbers<[1], [0], [0], [1], [0, 0, 1, 1], [], []>} : vector<8x160xbf16>, vector<160x512xbf16>, vector<8x512xf32> -> vector<8x512xf32>
    %c0_60 = arith.constant 0 : index
    %c1_61 = arith.constant 1 : index
    %121 = vector.load %arg6[%c0_60, %c1_61] : memref<8x3xf32, #tpu.memory_space<vmem>>, vector<8x1xf32>
    %122 = vector.broadcast %121 : vector<8x1xf32> to vector<8x512xf32>
    %123 = arith.addf %120, %122 : vector<8x512xf32>
    %cst_62 = arith.constant 0.000000e+00 : f32
    %124 = vector.broadcast %cst_62 : f32 to vector<8x512xf32>
    %125 = arith.maximumf %123, %124 : vector<8x512xf32>
    %126 = vector.extract_strided_slice %125 {offsets = [0, 0], sizes = [8, 256], strides = [1, 1]} : vector<8x512xf32> to vector<8x256xf32>
    %cst_63 = arith.constant dense<0.000000e+00> : vector<8xf32>
    %127 = vector.multi_reduction <add>, %126, %cst_63 [1] : vector<8x256xf32> to vector<8xf32>
    %128 = vector.shape_cast %127 : vector<8xf32> to vector<8x1xf32>
    %cst_64 = arith.constant 2.560000e+02 : f32
    %129 = vector.broadcast %cst_64 : f32 to vector<8x1xf32>
    %130 = arith.divf %128, %129 : vector<8x1xf32>
    %131 = vector.extract_strided_slice %125 {offsets = [0, 256], sizes = [8, 256], strides = [1, 1]} : vector<8x512xf32> to vector<8x256xf32>
    %cst_65 = arith.constant dense<0.000000e+00> : vector<8xf32>
    %132 = vector.multi_reduction <add>, %131, %cst_65 [1] : vector<8x256xf32> to vector<8xf32>
    %133 = vector.shape_cast %132 : vector<8xf32> to vector<8x1xf32>
    %cst_66 = arith.constant 2.560000e+02 : f32
    %134 = vector.broadcast %cst_66 : f32 to vector<8x1xf32>
    %135 = arith.divf %133, %134 : vector<8x1xf32>
    %136 = arith.truncf %125 : vector<8x512xf32> to vector<8x512xbf16>
    %c17_i32_67 = arith.constant 17 : i32
    %137 = tpu.dynamic_rotate %125 by %c17_i32_67 dim 1 : vector<8x512xf32>, i32 -> vector<8x512xf32>
    %c0_68 = arith.constant 0 : index
    %c0_69 = arith.constant 0 : index
    %138 = vector.load %arg2[%c0_68, %c0_69] : memref<9x512xf32, #tpu.memory_space<vmem>>, vector<1x512xf32>
    %139 = vector.broadcast %138 : vector<1x512xf32> to vector<8x512xf32>
    %140 = arith.mulf %137, %139 : vector<8x512xf32>
    %141 = arith.truncf %140 : vector<8x512xf32> to vector<8x512xbf16>
    %c16_i32_70 = arith.constant 16 : i32
    %142 = tpu.dynamic_rotate %125 by %c16_i32_70 dim 1 : vector<8x512xf32>, i32 -> vector<8x512xf32>
    %c1_71 = arith.constant 1 : index
    %c0_72 = arith.constant 0 : index
    %143 = vector.load %arg2[%c1_71, %c0_72] : memref<9x512xf32, #tpu.memory_space<vmem>>, vector<1x512xf32>
    %144 = vector.broadcast %143 : vector<1x512xf32> to vector<8x512xf32>
    %145 = arith.mulf %142, %144 : vector<8x512xf32>
    %146 = arith.truncf %145 : vector<8x512xf32> to vector<8x512xbf16>
    %c15_i32_73 = arith.constant 15 : i32
    %147 = tpu.dynamic_rotate %125 by %c15_i32_73 dim 1 : vector<8x512xf32>, i32 -> vector<8x512xf32>
    %c2_74 = arith.constant 2 : index
    %c0_75 = arith.constant 0 : index
    %148 = vector.load %arg2[%c2_74, %c0_75] : memref<9x512xf32, #tpu.memory_space<vmem>>, vector<1x512xf32>
    %149 = vector.broadcast %148 : vector<1x512xf32> to vector<8x512xf32>
    %150 = arith.mulf %147, %149 : vector<8x512xf32>
    %151 = arith.truncf %150 : vector<8x512xf32> to vector<8x512xbf16>
    %c1_i32_76 = arith.constant 1 : i32
    %152 = tpu.dynamic_rotate %125 by %c1_i32_76 dim 1 : vector<8x512xf32>, i32 -> vector<8x512xf32>
    %c3_77 = arith.constant 3 : index
    %c0_78 = arith.constant 0 : index
    %153 = vector.load %arg2[%c3_77, %c0_78] : memref<9x512xf32, #tpu.memory_space<vmem>>, vector<1x512xf32>
    %154 = vector.broadcast %153 : vector<1x512xf32> to vector<8x512xf32>
    %155 = arith.mulf %152, %154 : vector<8x512xf32>
    %156 = arith.truncf %155 : vector<8x512xf32> to vector<8x512xbf16>
    %c511_i32_79 = arith.constant 511 : i32
    %157 = tpu.dynamic_rotate %125 by %c511_i32_79 dim 1 : vector<8x512xf32>, i32 -> vector<8x512xf32>
    %c5_80 = arith.constant 5 : index
    %c0_81 = arith.constant 0 : index
    %158 = vector.load %arg2[%c5_80, %c0_81] : memref<9x512xf32, #tpu.memory_space<vmem>>, vector<1x512xf32>
    %159 = vector.broadcast %158 : vector<1x512xf32> to vector<8x512xf32>
    %160 = arith.mulf %157, %159 : vector<8x512xf32>
    %161 = arith.truncf %160 : vector<8x512xf32> to vector<8x512xbf16>
    %c497_i32_82 = arith.constant 497 : i32
    %162 = tpu.dynamic_rotate %125 by %c497_i32_82 dim 1 : vector<8x512xf32>, i32 -> vector<8x512xf32>
    %c6_83 = arith.constant 6 : index
    %c0_84 = arith.constant 0 : index
    %163 = vector.load %arg2[%c6_83, %c0_84] : memref<9x512xf32, #tpu.memory_space<vmem>>, vector<1x512xf32>
    %164 = vector.broadcast %163 : vector<1x512xf32> to vector<8x512xf32>
    %165 = arith.mulf %162, %164 : vector<8x512xf32>
    %166 = arith.truncf %165 : vector<8x512xf32> to vector<8x512xbf16>
    %c496_i32_85 = arith.constant 496 : i32
    %167 = tpu.dynamic_rotate %125 by %c496_i32_85 dim 1 : vector<8x512xf32>, i32 -> vector<8x512xf32>
    %c7_86 = arith.constant 7 : index
    %c0_87 = arith.constant 0 : index
    %168 = vector.load %arg2[%c7_86, %c0_87] : memref<9x512xf32, #tpu.memory_space<vmem>>, vector<1x512xf32>
    %169 = vector.broadcast %168 : vector<1x512xf32> to vector<8x512xf32>
    %170 = arith.mulf %167, %169 : vector<8x512xf32>
    %171 = arith.truncf %170 : vector<8x512xf32> to vector<8x512xbf16>
    %c495_i32_88 = arith.constant 495 : i32
    %172 = tpu.dynamic_rotate %125 by %c495_i32_88 dim 1 : vector<8x512xf32>, i32 -> vector<8x512xf32>
    %c8_89 = arith.constant 8 : index
    %c0_90 = arith.constant 0 : index
    %173 = vector.load %arg2[%c8_89, %c0_90] : memref<9x512xf32, #tpu.memory_space<vmem>>, vector<1x512xf32>
    %174 = vector.broadcast %173 : vector<1x512xf32> to vector<8x512xf32>
    %175 = arith.mulf %172, %174 : vector<8x512xf32>
    %176 = arith.truncf %175 : vector<8x512xf32> to vector<8x512xbf16>
    %cst_91 = arith.constant 0.000000e+00 : bf16
    %177 = vector.broadcast %cst_91 : bf16 to vector<8x512xbf16>
    %178 = tpu.concatenate %141, %146, %151, %156, %136, %161, %166, %171, %176, %177 in 0 : vector<8x512xbf16>, vector<8x512xbf16>, vector<8x512xbf16>, vector<8x512xbf16>, vector<8x512xbf16>, vector<8x512xbf16>, vector<8x512xbf16>, vector<8x512xbf16>, vector<8x512xbf16>, vector<8x512xbf16> -> vector<80x512xbf16>
    %c160 = arith.constant 160 : index
    %c0_92 = arith.constant 0 : index
    %179 = vector.load %arg11[%c160, %c0_92] : memref<240x512xbf16, #tpu.memory_space<vmem>>, vector<80x512xbf16>
    tpu.vector_store %arg11[%c160, %c0_92], %178 {strides = array<i32>} : memref<240x512xbf16, #tpu.memory_space<vmem>>, vector<80x512xbf16>,
    %c0_93 = arith.constant 0 : index
    %c0_94 = arith.constant 0 : index
    %180 = vector.load %arg5[%c0_93, %c0_94] : memref<8x240xbf16, #tpu.memory_space<vmem>>, vector<8x240xbf16>
    %c0_95 = arith.constant 0 : index
    %c0_96 = arith.constant 0 : index
    %181 = vector.load %arg11[%c0_95, %c0_96] : memref<240x512xbf16, #tpu.memory_space<vmem>>, vector<240x512xbf16>
    %cst_97 = arith.constant dense<0.000000e+00> : vector<8x512xf32>
    %182 = tpu.matmul %180, %181, %cst_97 {dimension_numbers = #tpu.dot_dimension_numbers<[1], [0], [0], [1], [0, 0, 1, 1], [], []>} : vector<8x240xbf16>, vector<240x512xbf16>, vector<8x512xf32> -> vector<8x512xf32>
    %c0_98 = arith.constant 0 : index
    %c2_99 = arith.constant 2 : index
    %183 = vector.load %arg6[%c0_98, %c2_99] : memref<8x3xf32, #tpu.memory_space<vmem>>, vector<8x1xf32>
    %184 = vector.broadcast %183 : vector<8x1xf32> to vector<8x512xf32>
    %185 = arith.addf %182, %184 : vector<8x512xf32>
    %cst_100 = arith.constant 0.000000e+00 : f32
    %186 = vector.broadcast %cst_100 : f32 to vector<8x512xf32>
    %187 = arith.maximumf %185, %186 : vector<8x512xf32>
    %188 = vector.extract_strided_slice %187 {offsets = [0, 0], sizes = [8, 256], strides = [1, 1]} : vector<8x512xf32> to vector<8x256xf32>
    %cst_101 = arith.constant dense<0.000000e+00> : vector<8xf32>
    %189 = vector.multi_reduction <add>, %188, %cst_101 [1] : vector<8x256xf32> to vector<8xf32>
    %190 = vector.shape_cast %189 : vector<8xf32> to vector<8x1xf32>
    %cst_102 = arith.constant 2.560000e+02 : f32
    %191 = vector.broadcast %cst_102 : f32 to vector<8x1xf32>
    %192 = arith.divf %190, %191 : vector<8x1xf32>
    %193 = vector.extract_strided_slice %187 {offsets = [0, 256], sizes = [8, 256], strides = [1, 1]} : vector<8x512xf32> to vector<8x256xf32>
    %cst_103 = arith.constant dense<0.000000e+00> : vector<8xf32>
    %194 = vector.multi_reduction <add>, %193, %cst_103 [1] : vector<8x256xf32> to vector<8xf32>
    %195 = vector.shape_cast %194 : vector<8xf32> to vector<8x1xf32>
    %cst_104 = arith.constant 2.560000e+02 : f32
    %196 = vector.broadcast %cst_104 : f32 to vector<8x1xf32>
    %197 = arith.divf %195, %196 : vector<8x1xf32>
    %198 = arith.truncf %187 : vector<8x512xf32> to vector<8x512xbf16>
    %199 = tpu.concatenate %12, %74, %136, %198 in 0 : vector<8x512xbf16>, vector<8x512xbf16>, vector<8x512xbf16>, vector<8x512xbf16> -> vector<32x512xbf16>
    %c0_105 = arith.constant 0 : index
    %c0_106 = arith.constant 0 : index
    %200 = vector.load %arg7[%c0_105, %c0_106] : memref<8x32xbf16, #tpu.memory_space<vmem>>, vector<8x32xbf16>
    %cst_107 = arith.constant dense<0.000000e+00> : vector<8x512xf32>
    %201 = tpu.matmul %200, %199, %cst_107 {dimension_numbers = #tpu.dot_dimension_numbers<[1], [0], [0], [1], [0, 0, 1, 1], [], []>} : vector<8x32xbf16>, vector<32x512xbf16>, vector<8x512xf32> -> vector<8x512xf32>
    %202 = tpu.concatenate %6, %68, %130, %192 in 0 : vector<8x1xf32>, vector<8x1xf32>, vector<8x1xf32>, vector<8x1xf32> -> vector<32x1xf32>
    %203 = tpu.concatenate %11, %73, %135, %197 in 0 : vector<8x1xf32>, vector<8x1xf32>, vector<8x1xf32>, vector<8x1xf32> -> vector<32x1xf32>
    %204 = tpu.concatenate %202, %203 in 1 : vector<32x1xf32>, vector<32x1xf32> -> vector<32x2xf32>
    %c0_108 = arith.constant 0 : index
    %c0_109 = arith.constant 0 : index
    %205 = vector.load %arg8[%c0_108, %c0_109] : memref<2x33xf32, #tpu.memory_space<vmem>>, vector<2x32xf32>
    %c0_110 = arith.constant 0 : index
    %c32 = arith.constant 32 : index
    %206 = vector.load %arg8[%c0_110, %c32] : memref<2x33xf32, #tpu.memory_space<vmem>>, vector<2x1xf32>
    %cst_111 = arith.constant dense<0.000000e+00> : vector<2x2xf32>
    %207 = tpu.matmul %205, %204, %cst_111 {dimension_numbers = #tpu.dot_dimension_numbers<[1], [0], [0], [1], [0, 0, 1, 1], [], []>} : vector<2x32xf32>, vector<32x2xf32>, vector<2x2xf32> -> vector<2x2xf32>
    %208 = vector.broadcast %206 : vector<2x1xf32> to vector<2x2xf32>
    %209 = arith.addf %207, %208 : vector<2x2xf32>
    %cst_112 = arith.constant 0.000000e+00 : f32
    %210 = vector.broadcast %cst_112 : f32 to vector<2x2xf32>
    %211 = arith.maximumf %209, %210 : vector<2x2xf32>
    %c0_113 = arith.constant 0 : index
    %c0_114 = arith.constant 0 : index
    %212 = vector.load %arg9[%c0_113, %c0_114] : memref<8x4xf32, #tpu.memory_space<vmem>>, vector<8x2xf32>
    %c0_115 = arith.constant 0 : index
    %c2_116 = arith.constant 2 : index
    %213 = vector.load %arg9[%c0_115, %c2_116] : memref<8x4xf32, #tpu.memory_space<vmem>>, vector<8x1xf32>
    %c0_117 = arith.constant 0 : index
    %c3_118 = arith.constant 3 : index
    %214 = vector.load %arg9[%c0_117, %c3_118] : memref<8x4xf32, #tpu.memory_space<vmem>>, vector<8x1xf32>
    %cst_119 = arith.constant dense<0.000000e+00> : vector<8x2xf32>
    %215 = tpu.matmul %212, %211, %cst_119 {dimension_numbers = #tpu.dot_dimension_numbers<[1], [0], [0], [1], [0, 0, 1, 1], [], []>} : vector<8x2xf32>, vector<2x2xf32>, vector<8x2xf32> -> vector<8x2xf32>
    %216 = vector.broadcast %213 : vector<8x1xf32> to vector<8x2xf32>
    %217 = arith.addf %215, %216 : vector<8x2xf32>
    %218 = arith.negf %217 : vector<8x2xf32>
    %219 = math.exp %218 : vector<8x2xf32>
    %cst_120 = arith.constant 1.000000e+00 : f32
    %220 = vector.broadcast %cst_120 : f32 to vector<8x2xf32>
    %221 = arith.addf %220, %219 : vector<8x2xf32>
    %222 = arith.divf %220, %221 : vector<8x2xf32>
    %223 = vector.extract_strided_slice %201 {offsets = [0, 0], sizes = [8, 256], strides = [1, 1]} : vector<8x512xf32> to vector<8x256xf32>
    %224 = vector.extract_strided_slice %222 {offsets = [0, 0], sizes = [8, 1], strides = [1, 1]} : vector<8x2xf32> to vector<8x1xf32>
    %225 = vector.broadcast %224 : vector<8x1xf32> to vector<8x256xf32>
    %226 = arith.mulf %223, %225 : vector<8x256xf32>
    %227 = vector.extract_strided_slice %201 {offsets = [0, 256], sizes = [8, 256], strides = [1, 1]} : vector<8x512xf32> to vector<8x256xf32>
    %228 = vector.extract_strided_slice %222 {offsets = [0, 1], sizes = [8, 1], strides = [1, 1]} : vector<8x2xf32> to vector<8x1xf32>
    %229 = vector.broadcast %228 : vector<8x1xf32> to vector<8x256xf32>
    %230 = arith.mulf %227, %229 : vector<8x256xf32>
    %231 = tpu.concatenate %226, %230 in 1 : vector<8x256xf32>, vector<8x256xf32> -> vector<8x512xf32>
    %232 = vector.broadcast %214 : vector<8x1xf32> to vector<8x512xf32>
    %233 = arith.addf %231, %232 : vector<8x512xf32>
    %234 = arith.addf %233, %1 : vector<8x512xf32>
    %c0_121 = arith.constant 0 : index
    %c0_122 = arith.constant 0 : index
    %c0_123 = arith.constant 0 : index
    %235 = vector.load %arg10[%c0_121, %c0_122, %c0_123] : memref<1x8x512xf32, #tpu.memory_space<vmem>>, vector<1x8x512xf32>
    %236 = vector.shape_cast %235 : vector<1x8x512xf32> to vector<8x512xf32>
    %237 = vector.shape_cast %234 : vector<8x512xf32> to vector<1x8x512xf32>
    tpu.vector_store %arg10[%c0_121, %c0_122, %c0_123], %237 {strides = array<i32>} : memref<1x8x512xf32, #tpu.memory_space<vmem>>, vector<1x8x512xf32>,
    return
  }
  func.func @transform_0(%arg0: i32) -> (i32, i32, i32) {
    %c0_i32 = arith.constant 0 : i32
    %c0_i32_0 = arith.constant 0 : i32
    %c0_i32_1 = arith.constant 0 : i32
    return %arg0, %c0_i32, %c0_i32_0 : i32, i32, i32
  }
  func.func @transform_1(%arg0: i32) -> (i32, i32) {
    %c0_i32 = arith.constant 0 : i32
    %c0_i32_0 = arith.constant 0 : i32
    %c0_i32_1 = arith.constant 0 : i32
    return %c0_i32, %c0_i32_0 : i32, i32
  }
  func.func @transform_2(%arg0: i32) -> (i32, i32) {
    %c0_i32 = arith.constant 0 : i32
    %c0_i32_0 = arith.constant 0 : i32
    %c0_i32_1 = arith.constant 0 : i32
    return %c0_i32, %c0_i32_0 : i32, i32
  }
  func.func @transform_3(%arg0: i32) -> (i32, i32) {
    %c0_i32 = arith.constant 0 : i32
    %c0_i32_0 = arith.constant 0 : i32
    %c0_i32_1 = arith.constant 0 : i32
    return %c0_i32, %c0_i32_0 : i32, i32
  }
  func.func @transform_4(%arg0: i32) -> (i32, i32) {
    %c0_i32 = arith.constant 0 : i32
    %c0_i32_0 = arith.constant 0 : i32
    %c0_i32_1 = arith.constant 0 : i32
    return %c0_i32, %c0_i32_0 : i32, i32
  }
  func.func @transform_5(%arg0: i32) -> (i32, i32) {
    %c0_i32 = arith.constant 0 : i32
    %c0_i32_0 = arith.constant 0 : i32
    %c0_i32_1 = arith.constant 0 : i32
    return %c0_i32, %c0_i32_0 : i32, i32
  }
  func.func @transform_6(%arg0: i32) -> (i32, i32) {
    %c0_i32 = arith.constant 0 : i32
    %c0_i32_0 = arith.constant 0 : i32
    %c0_i32_1 = arith.constant 0 : i32
    return %c0_i32, %c0_i32_0 : i32, i32
  }
  func.func @transform_7(%arg0: i32) -> (i32, i32) {
    %c0_i32 = arith.constant 0 : i32
    %c0_i32_0 = arith.constant 0 : i32
    %c0_i32_1 = arith.constant 0 : i32
    return %c0_i32, %c0_i32_0 : i32, i32
  }
  func.func @transform_8(%arg0: i32) -> (i32, i32) {
    %c0_i32 = arith.constant 0 : i32
    %c0_i32_0 = arith.constant 0 : i32
    %c0_i32_1 = arith.constant 0 : i32
    return %c0_i32, %c0_i32_0 : i32, i32
  }
  func.func @transform_9(%arg0: i32) -> (i32, i32, i32) {
    %c0_i32 = arith.constant 0 : i32
    %c0_i32_0 = arith.constant 0 : i32
    %c0_i32_1 = arith.constant 0 : i32
    return %arg0, %c0_i32, %c0_i32_0 : i32, i32, i32
  }
}

</mosaic_0001>

<bundles_post_ra>
// kernel: tpu_custom_call.1
= control target key start
LH: loop header
LB: loop body
LE: loop exit
PB: predicated region body
PF: predicated region fallthrough
CT: control target
= control target key end

     0   :  { %14 = vsyncpa [#allocation4], 0  ;;  %s4397_s0 = inlined_call_operand.hbm [shape: f32[2,8,512], index: 0, kind: input, shape index: {}]   ;;  %s4398_s1 = inlined_call_operand.hbm [shape: f32[9,512], index: 1, kind: input, shape index: {}]   ;;  %s4399_s2 = inlined_call_operand.vmem [shape: bf16[8,80], index: 2, kind: input, shape index: {}]   ;;  %s4400_s3 = inlined_call_operand.vmem [shape: bf16[8,160], index: 3, kind: input, shape index: {}]   ;;  %s4401_s4 = inlined_call_operand.vmem [shape: bf16[8,240], index: 4, kind: input, shape index: {}]   ;;  %s4402_s5 = inlined_call_operand.vmem [shape: f32[8,3], index: 5, kind: input, shape index: {}]   ;;  %s4403_s6 = inlined_call_operand.vmem [shape: bf16[8,32], index: 6, kind: input, shape index: {}]   ;;  %s4404_s7 = inlined_call_operand.vmem [shape: f32[2,33], index: 7, kind: input, shape index: {}]   ;;  %s4405_s8 = inlined_call_operand.vmem [shape: f32[8,4], index: 8, kind: input, shape index: {}]   ;;  %s4406_s9 = inlined_call_operand.hbm [shape: f32[2,8,512], index: 9, kind: output, shape index: {}]  }
   0x1   :  { %16 = vsyncpa [#allocation4 + $0x1], 0 }
   0x2   :  { %17 = vsyncpa [#allocation7], 0 }
   0x3   :  { %18 = vsyncpa [#allocation5], 0 }
   0x4   :  { %20 = vsyncpa [#allocation5 + $0x1], 0  ;;  %s3074_s30 = smov 0   ;;  %s3076_s10 = smov 0  }
   0x5   :  { %s3078_s11 = smov 0   ;;  %s3080_s12 = smov 0  }
   0x6 LB: > { %s3095_s13 = sadd.s32 4294967295, %s3001_s12   ;;  %s2691_s14 = sadd.s32 4294967294, %s3001_s12   ;;  %s3001_s12 = sphi %s3080_s12, %s4493_s12   ;;  %s2997_s11 = sphi %s3078_s11, %s4496_s11   ;;  %s2993_s10 = sphi %s3076_s10, %s4495_s10   ;;  %s2989_s30 = sphi %s3074_s30, %s4494_s30  }
   0x7   : > { %p46_p0 = scmp.ne.s32.totalorder %s2993_s10, %s2989_s30  ;;  %p4407_p1 = scmp.eq.s32.totalorder %s3095_s13, 0 }
   0x8   : > { %p244_p3 = scmp.eq.s32.totalorder %s2691_s14, 1  ;;  %p2692_p5 = scmp.ge.s32.totalorder %s3001_s12, 1 }
   0x9   : > { %p3104_p4 = por %p4407_p1, %p46_p0  ;;  %p251_p7 = scmp.lt.s32.totalorder %s3001_s12, 3 }
   0xa   : > { %p3109_p6 = por %p244_p3, %p46_p0  ;;  %s3003_s18 = smov [#allocation6]  }
   0xb   : > { %s4433_s15 = scalar_select %p3104_p4, 1, 0 }
   0xc   : > { %s4434_s16 = scalar_select %p3109_p6, 1, 0 }
   0xd   : > { %p3114_p8 = pnand %p2692_p5, %p251_p7  ;;  %s263_s19 = sshll.u32 %s3003_s18, 4  ;;  %s3118_s19 = int_to_ptr.vmem [resolvable:$true] %s263_s19 }
   0xe   : > { %4435 = sst [smem:[#allocation12_spill]] %s4434_s16  ;;  %s3130_s21 = sadd.s32 1, %s3001_s12  }
   0xf   : > { %s4436_s17 = scalar_select %p3114_p8, 1, 0 }
  0x10   : > { %p2774_p9 = pneg %p3114_p8  ;;  %4438 = sst [smem:[#allocation13_spill]] %s3130_s21 }
  0x11   : > { %s33_s22 = sadd.s32 1, %s2997_s11  ;;  %s30_s23 = ssub.s32 %s3001_s12, %s3130_s21 }
  0x12   : > { %p3125_p11 = pnand %p2774_p9, %p4407_p1  ;;  %s2873_s26 = scalar_lea.hbm %s4398_s1, 1024 }
  0x13   : > { %p2874_p12 = scmp.ne.s32.totalorder %s4398_s1, %s2873_s26  ;;  %p2880_p5 = scmp.lt.u32.totalorder %s2873_s26, %s4398_s1 }
  0x14   : > { %p2875_p13 = pneg %p3125_p11 }
  0x16   : > { %p2876_p0 = pnand %p2875_p13, %p2874_p12 }
  0x18   : > { %p2877_p3 = pneg %p2876_p0 }
  0x1a   : > { %p2882_p7 = pnand %p2880_p5, %p2877_p3 }
  0x1c   : > { %2885 = shalt.err (!%p2882_p7)
}
  0x1d   : > { %s2886_s18 = scalar_lea.vmem %s3118_s19, 1024  ;;  %p2894_p2 = scmp.lt.s32.totalorder %s3118_s19, %s3118_s19 }
  0x1e   : > { %p2887_p9 = scmp.ne.s32.totalorder %s3118_s19, %s2886_s18  ;;  %p2895_p6 = scmp.lt.s32.totalorder %s2886_s18, %s2886_s18 }
  0x20   : > { %p2889_p10 = pnand %p2887_p9, %p2875_p13  ;;  %p2896_p4 = por %p2895_p6, %p2894_p2 }
  0x22   : > { %p2890_p1 = pneg %p2889_p10 }
  0x24   : > { %p2897_p8 = pnand %p2896_p4, %p2890_p1 }
  0x26   : > { %2900 = shalt.err (!%p2897_p8)
}
  0x27   : > { %s3004_s24 = smov 512   ;;  %s3005_s25 = smov 32  }
  0x28   : > { %2777 = dma.hbm_to_vmem [thread:$0]  (!%p3125_p11), %s4398_s1, 1024, %s3118_s19, [#allocation7], %s3004_s24, %s3004_s24, %s3005_s25  }
  0x29   : > { %p31_p2 = scmp.eq.s32.totalorder %s30_s23, 0  ;;  %p40_p1 = scmp.ne.s32.totalorder %s2997_s11, %s2993_s10 }
  0x2a   : > { %p41_p4 = scmp.eq.s32.totalorder %s3001_s12, 0  ;;  %p2787_p6 = scmp.lt.s32.totalorder %s3001_s12, 2 }
  0x2b   : > { %s3161_s28 = scalar_select %p31_p2, %s2997_s11, %s33_s22  }
  0x2c   : > { %p42_p8 = por %p41_p4, %p40_p1  ;;  %p4439_p10 = scmp.eq.s32.totalorder %s3095_s13, 1 }
  0x2d   : > { %s298_s14 = sand.u32 1, %s2997_s11   ;;  %s2723_s18 = sshll.u32 %s3001_s12, 9 }
  0x2e   : > { %p3165_p12 = por %p4439_p10, %p40_p1  ;;  %s2695_s21 = sshll.u32 %s298_s14, 5 }
  0x2f   : > { %s3174_s26 = scalar_lea.hbm %s4397_s0, %s2723_s18  ;;  %s302_s19 = scalar_lea.vmem [#allocation3], %s2695_s21 }
  0x30   : > { %s310_s22 = sshll.u32 %s302_s19, 4  ;;  %p3176_p11 = pnand %p2787_p6, %p42_p8  ;;  %s3180_s22 = int_to_ptr.vmem [resolvable:$true] %s310_s22 }
  0x31   : > { %s299_s24 = scalar_lea.sflag [#allocation4], %s298_s14  ;;  %s2901_s25 = scalar_lea.hbm %s3174_s26, 512 }
  0x32   : > { %p2902_p13 = scmp.ne.s32.totalorder %s3174_s26, %s2901_s25  ;;  %p2903_p0 = pneg %p3176_p11 }
  0x33   : > { %s2906_s27 = scalar_lea.hbm %s4397_s0, 1024  ;;  %p2907_p7 = scmp.lt.u32.totalorder %s3174_s26, %s4397_s0 }
  0x34   : > { %p2904_p3 = pnand %p2903_p0, %p2902_p13  ;;  %p2908_p9 = scmp.lt.u32.totalorder %s2906_s27, %s2901_s25 }
  0x35   : > { %p2910_p1 = scmp.lt.u32.totalorder %s2901_s25, %s3174_s26 }
  0x36   : > { %p2905_p5 = pneg %p2904_p3  ;;  %p2909_p2 = por %p2908_p9, %p2907_p7 }
  0x38   : > { %p2911_p4 = por %p2910_p1, %p2909_p2 }
  0x3a   : > { %p2912_p6 = pnand %p2911_p4, %p2905_p5 }
  0x3c   : > { %2915 = shalt.err (!%p2912_p6)
}
  0x3d   : > { %s2916_s14 = scalar_lea.vmem %s3180_s22, 512  ;;  %s3006_s19 = smov [#allocation3]  }
  0x3e   : > { %p2917_p8 = scmp.ne.s32.totalorder %s3180_s22, %s2916_s14  ;;  %s2921_s16 = sshll.u32 %s3006_s19, 4  ;;  %s2922_s16 = int_to_ptr.vmem [resolvable:$false] %s2921_s16 }
  0x3f   : > { %s2923_s21 = scalar_lea.vmem %s2922_s16, 1024  ;;  %p2924_p3 = scmp.lt.s32.totalorder %s3180_s22, %s2922_s16 }
  0x40   : > { %p2919_p10 = pnand %p2917_p8, %p2903_p0  ;;  %p2925_p7 = scmp.lt.s32.totalorder %s2923_s21, %s2916_s14 }
  0x42   : > { %p2920_p13 = pneg %p2919_p10  ;;  %p2926_p9 = por %p2925_p7, %p2924_p3 }
  0x44   : > { %p2927_p2 = pnand %p2926_p9, %p2920_p13 }
  0x46   : > { %2930 = shalt.err (!%p2927_p2)
}
  0x47   : > { %2781 = dma.hbm_to_vmem [thread:$0]  (!%p3176_p11), %s3174_s26, 512, %s3180_s22, %s299_s24  }
  0x48   : > { %p4442_p5 = scmp.ne.s32.totalorder %s4436_s17, 0 }
  0x4a   : > { %319 = sbr.rel (%p4442_p5) target bundleno = 2163 (0x873), region = 56 }
  0x51   : > { %s3210_s25 = sand.u32 1, %s2993_s10   ;;  %p4443_p0 = scmp.ne.s32.totalorder %s4433_s15, 0 }
  0x52   : > { %s2699_s27 = sshll.u32 %s3210_s25, 5  ;;  %s322_s18 = scalar_lea.sflag [#allocation4], %s3210_s25 }
  0x53   : > { %s3216_s20 = scalar_lea.vmem [#allocation3], %s2699_s27 }
  0x54   : > { %2976 = dma.done.wait (%p4443_p0), %s322_s18, 512  }
  0x55   : > { %2978 = vsyncadd (%p4443_p0), %s322_s18, 4294966784  ;;  %p4444_p11 = scmp.eq.s32.totalorder %s3095_s13, 0 }
  0x57   : > { %2980 = dma.done.wait (%p4444_p11), [#allocation7], 1024   ;;  %p4445_p1 = pmov %p4444_p11 }
  0x58   : > { %v3227_v0 = vld [vmem:[%s3216_s20 + $0x10] sm:$0xff]  ;;  %v3230_v1 = vld [vmem:[%s3216_s20] sm:$0xff]  ;;  %s3007_s17 = smov 16   ;;  %v3237_v2 = vld [vmem:[%s3216_s20 + $0x18] sm:$0xff]  ;;  %s3008_s15 = smov 17   ;;  %v4414_v4 = vmov 0   ;;  %v390_v6 = vlaneseq }
  0x59   : > { %2982 = vsyncadd (%p4445_p1), [#allocation7], 4294966272  ;;  %431 = vrot.lane.b32.xlu0 %v3227_v0, %s3007_s17  ;;  %427 = vrot.lane.b32.xlu1 %v3230_v1, %s3007_s17  ;;  %v3240_v3 = vld [vmem:[%s3216_s20 + $0x8] sm:$0xff]  ;;  %s3009_s26 = smov 1   ;;  %s3010_s22 = smov 15   ;;  %v3308_v5 = vld [vmem:[%s4402_s5] sm:$0xff] }
  0x5a   : > { %s3011_s23 = smov 127   ;;  %s3012_s24 = smov 112   ;;  %928 = vmatprep.mubr.bf16.mxu0 %v4414_v4  ;;  %969 = vmatprep.mubr.bf16.mxu1 %v4414_v4  ;;  %v400_v7 = vshrl.u32 %v390_v6, 7  ;;  %v3311_v8 = vand.u32 127, %v390_v6  ;;  %vm767_vm2 = vcmask 1043456   ;;  %vm892_vm9 = vcmask 654336  }
  0x5b   : > { %s3013_s14 = smov 113   ;;  %s3015_s19 = smov 111   ;;  %2841 = vset.pattern.permute.xlu0 %v4414_v4  ;;  %v441_v12 = vld [vmem:[#allocation6 + $0x1] ss:$8 sm:$0xf]  ;;  %vm1511_vm10 = vcmask 261120  }
  0x5c   : > { %v3313_v9 = vsub.s32 3, %v400_v7  ;;  %v3315_v10 = vsub.s32 0, %v400_v7  ;;  %v3317_v11 = vsub.s32 1, %v400_v7  ;;  %v3319_v15 = vsub.s32 2, %v400_v7 }
  0x5d   : > { %433 = vrot.lane.b32.xlu0 %v3237_v2, %s3007_s17  ;;  %429 = vrot.lane.b32.xlu1 %v3240_v3, %s3007_s17  ;;  %vm435_vm0 = vcmp.lt.s32.totalorder %v3311_v8, 16  ;;  %v397_v22 = vld [vmem:[#allocation6] ss:$8 sm:$0xf]  ;;  %vm392_vm1 = vcmp.lt.s32.totalorder %v3311_v8, 17  ;;  %vm523_vm3 = vcmp.lt.s32.totalorder %v3311_v8, 1 }
  0x5e   : > { %v458_v16 = vrot.slane %v441_v12, %v3313_v9  ;;  %v446_v17 = vrot.slane %v441_v12, %v3315_v10  ;;  %v450_v18 = vrot.slane %v441_v12, %v3317_v11  ;;  %v454_v20 = vrot.slane %v441_v12, %v3319_v15  ;;  %v529_v46 = vld [vmem:[#allocation6 + $0x3] ss:$8 sm:$0xf] }
  0x5f   : > { %v414_v30 = vrot.slane %v397_v22, %v3313_v9  ;;  %v402_v36 = vrot.slane %v397_v22, %v3315_v10  ;;  %v406_v37 = vrot.slane %v397_v22, %v3317_v11  ;;  %v410_v38 = vrot.slane %v397_v22, %v3319_v15 }
  0x60   : > { %v546_v57 = vrot.slane %v529_v46, %v3313_v9  ;;  %vm479_vm4 = vcmp.lt.s32.totalorder %v3311_v8, 15  ;;  %vm567_vm5 = vcmp.lt.s32.totalorder %v3311_v8, 127  ;;  %vm655_vm6 = vcmp.lt.s32.totalorder %v3311_v8, 112 }
  0x61   : > { %386 = vrot.lane.b32.xlu0 %v3227_v0, %s3008_s15  ;;  %388 = vrot.lane.b32.xlu1 %v3237_v2, %s3008_s15  ;;  %vm611_vm7 = vcmp.lt.s32.totalorder %v3311_v8, 113  ;;  %vm699_vm8 = vcmp.lt.s32.totalorder %v3311_v8, 111  ;;  %vm2150_vm11 = vcmask 916480   ;;  %vm3019_vm12 = vmmov 0  }
  0x62   : > { %vm2394_vm13 = vcmask 7168   ;;  %vm2487_vm14 = vcmask 1041408   ;;  %vm2484_vm15 = vcmask 15360  }
  0x65   : > { %382 = vrot.lane.b32.xlu0 %v3230_v1, %s3008_s15  ;;  %384 = vrot.lane.b32.xlu1 %v3240_v3, %s3008_s15 }
  0x69   : > { %519 = vrot.lane.b32.xlu0 %v3227_v0, %s3009_s26  ;;  %521 = vrot.lane.b32.xlu1 %v3237_v2, %s3009_s26 }
  0x6d   : > { %515 = vrot.lane.b32.xlu0 %v3230_v1, %s3009_s26  ;;  %517 = vrot.lane.b32.xlu1 %v3240_v3, %s3009_s26 }
  0x71   : > { %475 = vrot.lane.b32.xlu0 %v3227_v0, %s3010_s22  ;;  %477 = vrot.lane.b32.xlu1 %v3237_v2, %s3010_s22 }
  0x75   : > { %471 = vrot.lane.b32.xlu0 %v3230_v1, %s3010_s22  ;;  %473 = vrot.lane.b32.xlu1 %v3240_v3, %s3010_s22 }
  0x79   : > { %559 = vrot.lane.b32.xlu0 %v3230_v1, %s3011_s23  ;;  %565 = vrot.lane.b32.xlu1 %v3237_v2, %s3011_s23 }
  0x7d   : > { %561 = vrot.lane.b32.xlu0 %v3240_v3, %s3011_s23  ;;  %563 = vrot.lane.b32.xlu1 %v3227_v0, %s3011_s23 }
  0x81   : > { %647 = vrot.lane.b32.xlu0 %v3230_v1, %s3012_s24  ;;  %653 = vrot.lane.b32.xlu1 %v3237_v2, %s3012_s24 }
  0x85   : > { %649 = vrot.lane.b32.xlu0 %v3240_v3, %s3012_s24  ;;  %651 = vrot.lane.b32.xlu1 %v3227_v0, %s3012_s24 }
  0x89   : > { %603 = vrot.lane.b32.xlu0 %v3230_v1, %s3013_s14  ;;  %609 = vrot.lane.b32.xlu1 %v3237_v2, %s3013_s14 }
  0x8d   : > { %605 = vrot.lane.b32.xlu0 %v3240_v3, %s3013_s14  ;;  %607 = vrot.lane.b32.xlu1 %v3227_v0, %s3013_s14 }
  0x91   : > { %691 = vrot.lane.b32.xlu0 %v3230_v1, %s3015_s19  ;;  %695 = vrot.lane.b32.xlu1 %v3227_v0, %s3015_s19 }
  0x95   : > { %697 = vrot.lane.b32.xlu0 %v3237_v2, %s3015_s19  ;;  %693 = vrot.lane.b32.xlu1 %v3240_v3, %s3015_s19 }
  0x99   : > { %889 = vperm.xlu0 %2841, %v3308_v5  }
  0xcb   : > { %v432_v13 = vpop.permute.xlu0 %431  ;;  %v428_v14 = vpop.permute.xlu1 %427 }
  0xcf   : > { %v434_v19 = vpop.permute.xlu0 %433  ;;  %v430_v21 = vpop.permute.xlu1 %429 }
  0xd0   : > { %v436_v23 = vsel %vm435_vm0, %v432_v13, %v434_v19  ;;  %v439_v24 = vsel %vm435_vm0, %v434_v19, %v428_v14  ;;  %v437_v25 = vsel %vm435_vm0, %v430_v21, %v432_v13  ;;  %v438_v26 = vsel %vm435_vm0, %v428_v14, %v430_v21 }
  0xd1   : > { %v466_v27 = vmul.f32 %v458_v16, %v436_v23  ;;  %v463_v28 = vmul.f32 %v446_v17, %v439_v24  ;;  %v464_v29 = vmul.f32 %v450_v18, %v438_v26  ;;  %v465_v32 = vmul.f32 %v454_v20, %v437_v25  ;;  %v485_v17 = vld [vmem:[#allocation6 + $0x2] ss:$8 sm:$0xf] }
  0xd2   : > { %v534_v14 = vrot.slane %v529_v46, %v3315_v10  ;;  %v538_v16 = vrot.slane %v529_v46, %v3317_v11  ;;  %v542_v20 = vrot.slane %v529_v46, %v3319_v15  ;;  %v502_v25 = vrot.slane %v485_v17, %v3313_v9 }
  0xd3   : > { %v470_v31 = vpack.c.bf16 %v466_v27, %v466_v27  ;;  %v387_v33 = vpop.permute.xlu0 %386  ;;  %v389_v34 = vpop.permute.xlu1 %388  ;;  %v467_v39 = vpack.c.bf16 %v463_v28, %v463_v28  ;;  %v468_v40 = vpack.c.bf16 %v464_v29, %v464_v29  ;;  %v469_v43 = vpack.c.bf16 %v465_v32, %v465_v32 }
  0xd4   : > { %v393_v35 = vsel %vm392_vm1, %v387_v33, %v389_v34 }
  0xd5   : > { %v422_v41 = vmul.f32 %v414_v30, %v393_v35  ;;  %v742_v42 = vrot.slane %v470_v31, 4  ;;  %v739_v54 = vrot.slane %v467_v39, 4  ;;  %v740_v55 = vrot.slane %v468_v40, 4 }
  0xd6   : > { %v741_v58 = vrot.slane %v469_v43, 4  ;;  %v494_v35 = vrot.slane %v485_v17, %v3317_v11 }
  0xd7   : > { %v383_v44 = vpop.permute.xlu0 %382  ;;  %v385_v45 = vpop.permute.xlu1 %384  ;;  %v426_v47 = vpack.c.bf16 %v422_v41, %v422_v41 }
  0xd8   : > { %v396_v48 = vsel %vm392_vm1, %v389_v34, %v383_v44  ;;  %v394_v49 = vsel %vm392_vm1, %v385_v45, %v387_v33  ;;  %v395_v50 = vsel %vm392_vm1, %v383_v44, %v385_v45  ;;  %v490_v34 = vrot.slane %v485_v17, %v3315_v10 }
  0xd9   : > { %v419_v51 = vmul.f32 %v402_v36, %v396_v48  ;;  %v420_v52 = vmul.f32 %v406_v37, %v395_v50  ;;  %v421_v53 = vmul.f32 %v410_v38, %v394_v49  ;;  %v3349_v56 = vsel %vm767_vm2, %v426_v47, %v742_v42  ;;  %v573_v37 = vld [vmem:[#allocation6 + $0x5] ss:$8 sm:$0xf] }
  0xda   : > { %937 = vmatprep.subr.bf16.mxu1 %v3349_v56  ;;  %v498_v36 = vrot.slane %v485_v17, %v3319_v15  ;;  %v590_v48 = vrot.slane %v573_v37, %v3313_v9 }
  0xdb   : > { %v423_v59 = vpack.c.bf16 %v419_v51, %v419_v51  ;;  %v424_v60 = vpack.c.bf16 %v420_v52, %v420_v52  ;;  %v425_v61 = vpack.c.bf16 %v421_v53, %v421_v53  ;;  %v520_v62 = vpop.permute.xlu0 %519  ;;  %v522_v63 = vpop.permute.xlu1 %521 }
  0xdc   : > { %v524_v6 = vsel %vm523_vm3, %v520_v62, %v522_v63 }
  0xdd   : > { %v3356_v7 = vsel %vm767_vm2, %v424_v60, %v740_v55  ;;  %v3359_v12 = vsel %vm767_vm2, %v425_v61, %v741_v58  ;;  %v3362_v13 = vsel %vm767_vm2, %v423_v59, %v739_v54  ;;  %v554_v18 = vmul.f32 %v546_v57, %v524_v6 }
  0xde   : > { %896 = vmatprep.subr.bf16.mxu0 %v3356_v7  ;;  %938 = vmatpush1.bf16.msra.mxu1 %v3359_v12  ;;  %v582_v6 = vrot.slane %v573_v37, %v3317_v11 }
  0xdf   : > { %v516_v19 = vpop.permute.xlu0 %515  ;;  %897 = vmatpush1.bf16.msra.mxu0 %v3362_v13  ;;  %v518_v21 = vpop.permute.xlu1 %517  ;;  %v558_v28 = vpack.c.bf16 %v554_v18, %v554_v18 }
  0xe0   : > { %v527_v22 = vsel %vm523_vm3, %v522_v63, %v516_v19  ;;  %v525_v23 = vsel %vm523_vm3, %v518_v21, %v520_v62  ;;  %v526_v24 = vsel %vm523_vm3, %v516_v19, %v518_v21  ;;  %v578_v63 = vrot.slane %v573_v37, %v3315_v10 }
  0xe1   : > { %v551_v26 = vmul.f32 %v534_v14, %v527_v22  ;;  %v552_v27 = vmul.f32 %v538_v16, %v526_v24  ;;  %v553_v29 = vmul.f32 %v542_v20, %v525_v23  ;;  %v750_v40 = vrot.slane %v558_v28, 4  ;;  %v661_v23 = vld [vmem:[#allocation6 + $0x7] ss:$8 sm:$0xf] }
  0xe2   : > { %v586_v14 = vrot.slane %v573_v37, %v3319_v15  ;;  %v3414_v24 = vpack.c.bf16 %v3237_v2, %v3237_v2  ;;  %v3426_v2 = vpack.c.bf16 %v3240_v3, %v3240_v3 }
  0xe3   : > { %v476_v30 = vpop.permute.xlu0 %475  ;;  %v478_v31 = vpop.permute.xlu1 %477  ;;  %v555_v38 = vpack.c.bf16 %v551_v26, %v551_v26  ;;  %v556_v39 = vpack.c.bf16 %v552_v27, %v552_v27  ;;  %v557_v41 = vpack.c.bf16 %v553_v29, %v553_v29 }
  0xe4   : > { %v480_v32 = vsel %vm479_vm4, %v476_v30, %v478_v31  ;;  %4446 = vst [vmem:[#allocation14_spill] sm:$0xff] %v3414_v24  ;;  %4447 = vst [vmem:[#allocation15_spill] sm:$0xff] %v3426_v2 }
  0xe5   : > { %v510_v33 = vmul.f32 %v502_v25, %v480_v32  ;;  %v747_v53 = vrot.slane %v555_v38, 4  ;;  %v748_v54 = vrot.slane %v556_v39, 4  ;;  %v749_v55 = vrot.slane %v557_v41, 4 }
  0xe6   : > { %v678_v32 = vrot.slane %v661_v23, %v3313_v9 }
  0xe7   : > { %v514_v42 = vpack.c.bf16 %v510_v33, %v510_v33  ;;  %v472_v43 = vpop.permute.xlu0 %471  ;;  %v474_v44 = vpop.permute.xlu1 %473  ;;  %v3430_v33 = vpack.c.bf16 %v3227_v0, %v3227_v0 }
  0xe8   : > { %v483_v45 = vsel %vm479_vm4, %v478_v31, %v472_v43  ;;  %v481_v46 = vsel %vm479_vm4, %v474_v44, %v476_v30  ;;  %v482_v47 = vsel %vm479_vm4, %v472_v43, %v474_v44  ;;  %v670_v43 = vrot.slane %v661_v23, %v3317_v11 }
  0xe9   : > { %v507_v49 = vmul.f32 %v490_v34, %v483_v45  ;;  %v508_v50 = vmul.f32 %v494_v35, %v482_v47  ;;  %v509_v51 = vmul.f32 %v498_v36, %v481_v46  ;;  %v3392_v52 = vsel %vm767_vm2, %v514_v42, %v750_v40  ;;  %4448 = vst [vmem:[#allocation16_spill] sm:$0xff] %v3430_v33  ;;  %v617_v45 = vld [vmem:[#allocation6 + $0x6] ss:$8 sm:$0xf] }
  0xea   : > { %939 = vmatprep.subr.bf16.mxu1 %v3392_v52  ;;  %v3434_v34 = vpack.c.bf16 %v3230_v1, %v3230_v1  ;;  %v666_v1 = vrot.slane %v661_v23, %v3315_v10  ;;  %v674_v44 = vrot.slane %v661_v23, %v3319_v15 }
  0xeb   : > { %v511_v57 = vpack.c.bf16 %v507_v49, %v507_v49  ;;  %v512_v58 = vpack.c.bf16 %v508_v50, %v508_v50  ;;  %v513_v59 = vpack.c.bf16 %v509_v51, %v509_v51  ;;  %v560_v60 = vpop.permute.xlu0 %559  ;;  %v566_v61 = vpop.permute.xlu1 %565 }
  0xec   : > { %v571_v62 = vsel %vm567_vm5, %v566_v61, %v560_v60  ;;  %4449 = vst [vmem:[#allocation17_spill] sm:$0xff] %v3434_v34 }
  0xed   : > { %v598_v16 = vmul.f32 %v590_v48, %v571_v62  ;;  %v3401_v17 = vsel %vm767_vm2, %v512_v58, %v748_v54  ;;  %v3404_v18 = vsel %vm767_vm2, %v513_v59, %v749_v55  ;;  %v3407_v19 = vsel %vm767_vm2, %v511_v57, %v747_v53 }
  0xee   : > { %898 = vmatprep.subr.bf16.mxu0 %v3401_v17  ;;  %940 = vmatpush1.bf16.msra.mxu1 %v3404_v18  ;;  %v634_v57 = vrot.slane %v617_v45, %v3313_v9 }
  0xef   : > { %v602_v20 = vpack.c.bf16 %v598_v16, %v598_v16  ;;  %v562_v21 = vpop.permute.xlu0 %561  ;;  %899 = vmatpush1.bf16.msra.mxu0 %v3407_v19  ;;  %v564_v22 = vpop.permute.xlu1 %563  ;;  %v622_v16 = vrot.slane %v617_v45, %v3315_v10 }
  0xf0   : > { %v570_v25 = vsel %vm567_vm5, %v560_v60, %v562_v21  ;;  %v568_v26 = vsel %vm567_vm5, %v564_v22, %v566_v61  ;;  %v569_v27 = vsel %vm567_vm5, %v562_v21, %v564_v22  ;;  %v630_v21 = vrot.slane %v617_v45, %v3319_v15 }
  0xf1   : > { %v758_v28 = vrot.slane %v602_v20, 4  ;;  %v595_v29 = vmul.f32 %v578_v63, %v570_v25  ;;  %v596_v30 = vmul.f32 %v582_v6, %v569_v27  ;;  %v597_v31 = vmul.f32 %v586_v14, %v568_v26 }
  0xf2   : > { %v626_v20 = vrot.slane %v617_v45, %v3317_v11 }
  0xf3   : > { %v599_v35 = vpack.c.bf16 %v595_v29, %v595_v29  ;;  %v600_v36 = vpack.c.bf16 %v596_v30, %v596_v30  ;;  %v601_v37 = vpack.c.bf16 %v597_v31, %v597_v31  ;;  %v648_v38 = vpop.permute.xlu0 %647  ;;  %v654_v39 = vpop.permute.xlu1 %653  ;;  %v3438_v40 = vsel %vm767_vm2, %v3414_v24, %v758_v28 }
  0xf4   : > { %v659_v3 = vsel %vm655_vm6, %v654_v39, %v648_v38  ;;  %941 = vmatprep.subr.bf16.mxu1 %v3438_v40 }
  0xf5   : > { %v755_v0 = vrot.slane %v599_v35, 4  ;;  %v756_v41 = vrot.slane %v600_v36, 4  ;;  %v757_v42 = vrot.slane %v601_v37, 4  ;;  %v686_v46 = vmul.f32 %v678_v32, %v659_v3 }
  0xf7   : > { %v650_v47 = vpop.permute.xlu0 %649  ;;  %v652_v48 = vpop.permute.xlu1 %651  ;;  %v3448_v49 = vsel %vm767_vm2, %v3426_v2, %v756_v41  ;;  %v3452_v50 = vsel %vm767_vm2, %v3430_v33, %v757_v42  ;;  %v3456_v51 = vsel %vm767_vm2, %v3434_v34, %v755_v0  ;;  %v690_v60 = vpack.c.bf16 %v686_v46, %v686_v46 }
  0xf8   : > { %4450 = vst [vmem:[#allocation18_spill] sm:$0xff] %v3456_v51  ;;  %v658_v53 = vsel %vm655_vm6, %v648_v38, %v650_v47  ;;  %v656_v54 = vsel %vm655_vm6, %v652_v48, %v654_v39  ;;  %v657_v55 = vsel %vm655_vm6, %v650_v47, %v652_v48  ;;  %900 = vmatprep.subr.bf16.mxu0 %v3448_v49  ;;  %v705_v39 = vld [vmem:[#allocation6 + $0x20] ss:$8 sm:$0xf] }
  0xf9   : > { %942 = vmatpush1.bf16.msra.mxu1 %v3452_v50  ;;  %901 = vmatpush1.bf16.msra.mxu0 %v3456_v51  ;;  %v683_v58 = vmul.f32 %v666_v1, %v658_v53  ;;  %v684_v59 = vmul.f32 %v670_v43, %v657_v55  ;;  %v685_v61 = vmul.f32 %v674_v44, %v656_v54  ;;  %v766_v25 = vrot.slane %v690_v60, 4 }
  0xfa   : > { %v718_v46 = vrot.slane %v705_v39, %v3319_v15  ;;  %v722_v47 = vrot.slane %v705_v39, %v3313_v9  ;;  %v710_v48 = vrot.slane %v705_v39, %v3315_v10  ;;  %v714_v55 = vrot.slane %v705_v39, %v3317_v11 }
  0xfb   : > { %v604_v62 = vpop.permute.xlu0 %603  ;;  %v610_v63 = vpop.permute.xlu1 %609  ;;  %v687_v22 = vpack.c.bf16 %v683_v58, %v683_v58  ;;  %v688_v23 = vpack.c.bf16 %v684_v59, %v684_v59  ;;  %v689_v26 = vpack.c.bf16 %v685_v61, %v685_v61 }
  0xfc   : > { %v615_v6 = vsel %vm611_vm7, %v610_v63, %v604_v62 }
  0xfd   : > { %v642_v14 = vmul.f32 %v634_v57, %v615_v6  ;;  %v763_v3 = vrot.slane %v687_v22, 4  ;;  %v764_v0 = vrot.slane %v688_v23, 4  ;;  %v765_v41 = vrot.slane %v689_v26, 4 }
  0xff   : > { %v646_v27 = vpack.c.bf16 %v642_v14, %v642_v14  ;;  %v606_v28 = vpop.permute.xlu0 %605  ;;  %v608_v29 = vpop.permute.xlu1 %607 }
 0x100   : > { %v614_v30 = vsel %vm611_vm7, %v604_v62, %v606_v28  ;;  %v612_v31 = vsel %vm611_vm7, %v608_v29, %v610_v63  ;;  %v613_v32 = vsel %vm611_vm7, %v606_v28, %v608_v29  ;;  %v865_v28 = vld [vmem:[%s4399_s2] sm:$0xf] }
 0x101   : > { %v639_v35 = vmul.f32 %v622_v16, %v614_v30  ;;  %v640_v36 = vmul.f32 %v626_v20, %v613_v32  ;;  %v641_v37 = vmul.f32 %v630_v21, %v612_v31  ;;  %v3481_v38 = vsel %vm767_vm2, %v646_v27, %v766_v25 }
 0x102   : > { %4451 = vst [vmem:[#allocation19_spill] sm:$0xff] %v3481_v38  ;;  %943 = vmatprep.subr.bf16.mxu1 %v3481_v38 }
 0x103   : > { %v643_v42 = vpack.c.bf16 %v639_v35, %v639_v35  ;;  %v644_v1 = vpack.c.bf16 %v640_v36, %v640_v36  ;;  %v645_v43 = vpack.c.bf16 %v641_v37, %v641_v37  ;;  %v692_v44 = vpop.permute.xlu0 %691  ;;  %v696_v45 = vpop.permute.xlu1 %695 }
 0x105   : > { %v3489_v53 = vsel %vm767_vm2, %v644_v1, %v764_v0  ;;  %v3492_v54 = vsel %vm767_vm2, %v645_v43, %v765_v41  ;;  %v3496_v57 = vsel %vm767_vm2, %v643_v42, %v763_v3 }
 0x106   : > { %4452 = vst [vmem:[#allocation20_spill] sm:$0xff] %v3489_v53  ;;  %4453 = vst [vmem:[#allocation21_spill] sm:$0xff] %v3492_v54  ;;  %902 = vmatprep.subr.bf16.mxu0 %v3489_v53  ;;  %944 = vmatpush1.bf16.msra.mxu1 %v3492_v54 }
 0x107   : > { %4454 = vst [vmem:[#allocation22_spill] sm:$0xff] %v3496_v57  ;;  %v698_v58 = vpop.permute.xlu0 %697  ;;  %v694_v59 = vpop.permute.xlu1 %693  ;;  %903 = vmatpush1.bf16.msra.mxu0 %v3496_v57 }
 0x108   : > { %v700_v60 = vsel %vm699_vm8, %v696_v45, %v698_v58  ;;  %v703_v61 = vsel %vm699_vm8, %v698_v58, %v692_v44  ;;  %v701_v62 = vsel %vm699_vm8, %v694_v59, %v696_v45  ;;  %v702_v63 = vsel %vm699_vm8, %v692_v44, %v694_v59 }
 0x109   : > { %v729_v6 = vmul.f32 %v718_v46, %v700_v60  ;;  %v730_v14 = vmul.f32 %v722_v47, %v703_v61  ;;  %v727_v16 = vmul.f32 %v710_v48, %v702_v63  ;;  %v728_v20 = vmul.f32 %v714_v55, %v701_v62  ;;  %v3629_v55 = vld [vmem:[%s4400_s3] sm:$0xff] }
 0x10a   : > { %v2705_v58 = vcombine.high %v3629_v55, %v3629_v55  ;;  %v4413_v59 = vmov 1  }
 0x10b   : > { %v733_v21 = vpack.c.bf16 %v729_v6, %v729_v6  ;;  %v3509_v22 = vpack.c.bf16 %v730_v14, %v730_v14  ;;  %v731_v23 = vpack.c.bf16 %v727_v16, %v727_v16  ;;  %v3511_v25 = vpack.c.bf16 %v728_v20, %v728_v20  ;;  %2842 = vset.pattern.permute.xlu0 %v4413_v59 }
 0x10d   : > { %4455 = vst [vmem:[#allocation23_spill] sm:$0xff] %v3509_v22  ;;  %4456 = vst [vmem:[#allocation24_spill] sm:$0xff] %v3511_v25  ;;  %2725 = vmatprep.subr.msk.bf16.mxu0 %vm767_vm2, %v3511_v25  ;;  %2726 = vmatprep.subr.msk.bf16.mxu1 %vm767_vm2, %v3509_v22  ;;  %v3518_v26 = vsel %vm767_vm2, %v731_v23, 0  ;;  %v3521_v27 = vsel %vm767_vm2, %v733_v21, 0 }
 0x10e   : > { %4457 = vst [vmem:[#allocation25_spill] sm:$0xff] %v3518_v26  ;;  %4458 = vst [vmem:[#allocation26_spill] sm:$0xff] %v3521_v27  ;;  %905 = vmatpush1.bf16.msra.mxu0 %v3518_v26  ;;  %946 = vmatpush1.bf16.msra.mxu1 %v3521_v27  ;;  %v1048_v21 = vld [vmem:[#allocation6 + $0x1] ss:$8 sm:$0xf] }
 0x10f   : > { %1515 = vmatprep.subr.bf16.mxu0 %v3356_v7  ;;  %1556 = vmatprep.subr.bf16.mxu1 %v3349_v56  ;;  %v1065_v23 = vrot.slane %v1048_v21, %v3313_v9 }
 0x111   : > { %2702 = vmatmul.mubr.msk.bf16.vlgmr.msra.gmra.mrb[0].mxu0 %vm892_vm9, %v865_v28  ;;  %2703 = vmatmul.mubr.msk.bf16.vlgmr.msra.gmra.mrb[0].mxu1 %vm892_vm9, %v865_v28 }
 0x112   : > { %1516 = vmatpush1.bf16.msra.mxu0 %v3362_v13  ;;  %1557 = vmatpush1.bf16.msra.mxu1 %v3359_v12 }
 0x113   : > { %1517 = vmatprep.subr.bf16.mxu0 %v3401_v17  ;;  %1558 = vmatprep.subr.bf16.mxu1 %v3392_v52 }
 0x114   : > { %2707 = vmatprep.mubr.msk.bf16.mxu1 %vm1511_vm10, %v2705_v58  ;;  %2706 = vmatprep.mubr.msk.bf16.mxu0 %vm1511_vm10, %v2705_v58 }
 0x116   : > { %1518 = vmatpush1.bf16.msra.mxu0 %v3407_v19  ;;  %1559 = vmatpush1.bf16.msra.mxu1 %v3404_v18 }
 0x117   : > { %1519 = vmatprep.subr.bf16.mxu0 %v3448_v49  ;;  %1560 = vmatprep.subr.bf16.mxu1 %v3438_v40 }
 0x118   : > { %v890_v29 = vpop.permute.xlu0 %889 }
 0x11a   : > { %1520 = vmatpush1.bf16.msra.mxu0 %v3456_v51  ;;  %1561 = vmatpush1.bf16.msra.mxu1 %v3452_v50 }
 0x11b   : > { %1521 = vmatprep.subr.bf16.mxu0 %v3489_v53  ;;  %1562 = vmatprep.subr.bf16.mxu1 %v3481_v38 }
 0x11e   : > { %1522 = vmatpush1.bf16.msra.mxu0 %v3496_v57  ;;  %1563 = vmatpush1.bf16.msra.mxu1 %v3492_v54 }
 0x11f   : > { %2727 = vmatprep.subr.msk.bf16.mxu0 %vm767_vm2, %v3511_v25  ;;  %2729 = vmatprep.subr.msk.bf16.mxu1 %vm767_vm2, %v3509_v22 }
 0x122   : > { %1524 = vmatpush1.bf16.msra.mxu0 %v3518_v26  ;;  %1565 = vmatpush1.bf16.msra.mxu1 %v3521_v27 }
 0x1e4   : > { %v930_v30 = vpop.f32.mrb[0].mxu0  ;;  %v971_v31 = vpop.f32.mrb[0].mxu1 }
 0x1e5   : > { %v931_v32 = vadd.f32 %v930_v30, %v890_v29  ;;  %v972_v35 = vadd.f32 %v971_v31, %v890_v29  ;;  %v932_v36 = vpop.f32.mrb[1].mxu0  ;;  %v973_v37 = vpop.f32.mrb[1].mxu1  ;;  %v1006_v30 = vld [vmem:[#allocation6] ss:$8 sm:$0xf] }
 0x1e6   : > { %v933_v39 = vadd.f32 %v932_v36, %v890_v29  ;;  %v974_v3 = vadd.f32 %v973_v37, %v890_v29  ;;  %v975_v0 = vpop.f32.mrb[2].mxu1  ;;  %v934_v41 = vpop.f32.mrb[2].mxu0 }
 0x1e7   : > { %v3550_v42 = vmax.f32 %v931_v32, 0.0  ;;  %v3552_v1 = vmax.f32 %v972_v35, 0.0  ;;  %v976_v43 = vpop.f32.mrb[3].mxu1  ;;  %v935_v44 = vpop.f32.mrb[3].mxu0  ;;  %v1057_v32 = vrot.slane %v1048_v21, %v3317_v11  ;;  %v1061_v35 = vrot.slane %v1048_v21, %v3319_v15 }
 0x1e8   : > { %v3554_v45 = vmax.f32 %v933_v39, 0.0  ;;  %v3556_v46 = vmax.f32 %v974_v3, 0.0  ;;  %v1053_v39 = vrot.slane %v1048_v21, %v3315_v10  ;;  %v1023_v43 = vrot.slane %v1006_v30, %v3313_v9 }
 0x1e9   : > { %1040 = vrot.lane.b32.xlu1 %v3552_v1, %s3007_s17  ;;  %1036 = vrot.lane.b32.xlu0 %v3550_v42, %s3007_s17  ;;  %v1011_v44 = vrot.slane %v1006_v30, %v3315_v10 }
 0x1ea   : > { %v3564_v47 = vadd.f32 %v3556_v46, %v3552_v1  ;;  %v3568_v48 = vadd.f32 %v3554_v45, %v3550_v42 }
 0x1ec   : > { %4459 = vst [vmem:[#allocation27_spill] sm:$0xff] %v3564_v47  ;;  %4460 = vst [vmem:[#allocation28_spill] sm:$0xff] %v3568_v48 }
 0x1ed   : > { %1166 = vrot.lane.b32.xlu1 %v3552_v1, %s3011_s23  ;;  %998 = vrot.lane.b32.xlu0 %v3552_v1, %s3008_s15 }
 0x1f1   : > { %1250 = vrot.lane.b32.xlu1 %v3552_v1, %s3012_s24  ;;  %994 = vrot.lane.b32.xlu0 %v3550_v42, %s3008_s15 }
 0x1f5   : > { %1208 = vrot.lane.b32.xlu1 %v3552_v1, %s3013_s14  ;;  %1124 = vrot.lane.b32.xlu0 %v3552_v1, %s3009_s26 }
 0x1f9   : > { %1042 = vrot.lane.b32.xlu1 %v3556_v46, %s3007_s17  ;;  %1120 = vrot.lane.b32.xlu0 %v3550_v42, %s3009_s26 }
 0x1fd   : > { %1038 = vrot.lane.b32.xlu1 %v3554_v45, %s3007_s17  ;;  %1082 = vrot.lane.b32.xlu0 %v3552_v1, %s3010_s22 }
 0x201   : > { %1000 = vrot.lane.b32.xlu1 %v3556_v46, %s3008_s15  ;;  %1078 = vrot.lane.b32.xlu0 %v3550_v42, %s3010_s22 }
 0x205   : > { %996 = vrot.lane.b32.xlu1 %v3554_v45, %s3008_s15  ;;  %1162 = vrot.lane.b32.xlu0 %v3550_v42, %s3011_s23 }
 0x209   : > { %1126 = vrot.lane.b32.xlu1 %v3556_v46, %s3009_s26  ;;  %1246 = vrot.lane.b32.xlu0 %v3550_v42, %s3012_s24 }
 0x20d   : > { %1122 = vrot.lane.b32.xlu1 %v3554_v45, %s3009_s26  ;;  %1204 = vrot.lane.b32.xlu0 %v3550_v42, %s3013_s14 }
 0x211   : > { %1084 = vrot.lane.b32.xlu1 %v3556_v46, %s3010_s22  ;;  %1288 = vrot.lane.b32.xlu0 %v3550_v42, %s3015_s19 }
 0x215   : > { %1080 = vrot.lane.b32.xlu1 %v3554_v45, %s3010_s22  ;;  %1164 = vrot.lane.b32.xlu0 %v3554_v45, %s3011_s23 }
 0x219   : > { %1168 = vrot.lane.b32.xlu1 %v3556_v46, %s3011_s23  ;;  %1248 = vrot.lane.b32.xlu0 %v3554_v45, %s3012_s24 }
 0x21d   : > { %1252 = vrot.lane.b32.xlu1 %v3556_v46, %s3012_s24  ;;  %1206 = vrot.lane.b32.xlu0 %v3554_v45, %s3013_s14 }
 0x221   : > { %1210 = vrot.lane.b32.xlu1 %v3556_v46, %s3013_s14  ;;  %1294 = vrot.lane.b32.xlu0 %v3556_v46, %s3015_s19 }
 0x225   : > { %1292 = vrot.lane.b32.xlu1 %v3552_v1, %s3015_s19  ;;  %1502 = vperm.xlu0 %2842, %v3308_v5  }
 0x229   : > { %1290 = vrot.lane.b32.xlu1 %v3554_v45, %s3015_s19 }
 0x25b   : > { %v1041_v60 = vpop.permute.xlu1 %1040  ;;  %v1037_v61 = vpop.permute.xlu0 %1036 }
 0x25f   : > { %v3641_v62 = vpop.permute.xlu1 %1166  ;;  %v999_v63 = vpop.permute.xlu0 %998 }
 0x263   : > { %v3643_v6 = vpop.permute.xlu1 %1250  ;;  %v995_v14 = vpop.permute.xlu0 %994 }
 0x267   : > { %v3645_v16 = vpop.permute.xlu1 %1208  ;;  %v3647_v20 = vpop.permute.xlu0 %1124 }
 0x26b   : > { %v1043_v28 = vpop.permute.xlu1 %1042  ;;  %v3650_v29 = vpop.permute.xlu0 %1120 }
 0x26c   : > { %v1044_v5 = vsel %vm435_vm0, %v1041_v60, %v1043_v28  ;;  %v1047_v41 = vsel %vm435_vm0, %v1043_v28, %v1037_v61  ;;  %v1019_v28 = vrot.slane %v1006_v30, %v3319_v15 }
 0x26d   : > { %v1073_v31 = vmul.f32 %v1065_v23, %v1044_v5  ;;  %v1070_v21 = vmul.f32 %v1053_v39, %v1047_v41  ;;  %v1132_v39 = vld [vmem:[#allocation6 + $0x3] ss:$8 sm:$0xf] }
 0x26f   : > { %v1039_v36 = vpop.permute.xlu1 %1038  ;;  %v3656_v37 = vpop.permute.xlu0 %1082  ;;  %v1077_v58 = vpack.c.bf16 %v1073_v31, %v1073_v31  ;;  %v1074_v41 = vpack.c.bf16 %v1070_v21, %v1070_v21 }
 0x270   : > { %v1045_v3 = vsel %vm435_vm0, %v1039_v36, %v1041_v60  ;;  %v1046_v0 = vsel %vm435_vm0, %v1037_v61, %v1039_v36  ;;  %v1015_v61 = vrot.slane %v1006_v30, %v3317_v11 }
 0x271   : > { %v1071_v23 = vmul.f32 %v1057_v32, %v1046_v0  ;;  %v1072_v5 = vmul.f32 %v1061_v35, %v1045_v3  ;;  %v1337_v2 = vrot.slane %v1077_v58, 4 }
 0x273   : > { %v1001_v59 = vpop.permute.xlu1 %1000  ;;  %v3667_v4 = vpop.permute.xlu0 %1078  ;;  %v1075_v31 = vpack.c.bf16 %v1071_v23, %v1071_v23  ;;  %v1076_v32 = vpack.c.bf16 %v1072_v5, %v1072_v5 }
 0x274   : > { %v1002_v60 = vsel %vm392_vm1, %v999_v63, %v1001_v59  ;;  %v1005_v36 = vsel %vm392_vm1, %v1001_v59, %v995_v14 }
 0x275   : > { %v1031_v48 = vmul.f32 %v1023_v43, %v1002_v60  ;;  %v1028_v34 = vmul.f32 %v1011_v44, %v1005_v36  ;;  %v1335_v58 = vrot.slane %v1075_v31, 4  ;;  %v1336_v23 = vrot.slane %v1076_v32, 4 }
 0x276   : > { %v3704_v31 = vpack.c.bf16 %v3554_v45, %v3554_v45  ;;  %v1145_v32 = vrot.slane %v1132_v39, %v3319_v15 }
 0x277   : > { %v1035_v35 = vpack.c.bf16 %v1031_v48, %v1031_v48  ;;  %v997_v3 = vpop.permute.xlu1 %996  ;;  %v3675_v0 = vpop.permute.xlu0 %1162  ;;  %v1032_v44 = vpack.c.bf16 %v1028_v34, %v1028_v34  ;;  %v1149_v48 = vrot.slane %v1132_v39, %v3313_v9  ;;  %v1137_v34 = vrot.slane %v1132_v39, %v3315_v10 }
 0x278   : > { %v1003_v33 = vsel %vm392_vm1, %v997_v3, %v999_v63  ;;  %v1004_v59 = vsel %vm392_vm1, %v995_v14, %v997_v3  ;;  %v1334_v63 = vrot.slane %v1074_v41, 4  ;;  %v3713_v3 = vld [vmem:[#allocation6 + $0x5] ss:$8 sm:$0xf] }
 0x279   : > { %v1029_v43 = vmul.f32 %v1015_v61, %v1004_v59  ;;  %v1030_v60 = vmul.f32 %v1019_v28, %v1003_v33  ;;  %v3682_v30 = vsel %vm767_vm2, %v1035_v35, %v1337_v2  ;;  %v3693_v2 = vpack.c.bf16 %v3550_v42, %v3550_v42  ;;  %v1090_v28 = vld [vmem:[#allocation6 + $0x2] ss:$8 sm:$0xf] }
 0x27a   : > { %4461 = vst [vmem:[#allocation29_spill] sm:$0xff] %v3682_v30  ;;  %1566 = vmatprep.subr.bf16.mxu1 %v3682_v30  ;;  %v1141_v42 = vrot.slane %v1132_v39, %v3317_v11  ;;  %v3711_v35 = vsel %vm767_vm2, %v1032_v44, %v1334_v63  ;;  %v3727_v39 = vpack.c.bf16 %v3552_v1, %v3552_v1 }
 0x27b   : > { %v1033_v5 = vpack.c.bf16 %v1029_v43, %v1029_v43  ;;  %v1034_v21 = vpack.c.bf16 %v1030_v60, %v1030_v60  ;;  %v1127_v36 = vpop.permute.xlu1 %1126  ;;  %v3686_v24 = vpop.permute.xlu0 %1246  ;;  %4464 = vst [vmem:[#allocation32_spill] sm:$0xff] %v3711_v35  ;;  %v3723_v60 = vpack.c.bf16 %v3556_v46, %v3556_v46  ;;  %v1099_v46 = vrot.slane %v1090_v28, %v3317_v11 }
 0x27c   : > { %v1128_v33 = vsel %vm523_vm3, %v3647_v20, %v1127_v36  ;;  %v1131_v41 = vsel %vm523_vm3, %v1127_v36, %v3650_v29  ;;  %v1179_v1 = vrot.slane %v3713_v3, %v3315_v10 }
 0x27d   : > { %v3697_v14 = vsel %vm767_vm2, %v1033_v5, %v1335_v58  ;;  %v3700_v61 = vsel %vm767_vm2, %v1034_v21, %v1336_v23  ;;  %v1157_v59 = vmul.f32 %v1149_v48, %v1128_v33  ;;  %v1095_v58 = vrot.slane %v1090_v28, %v3315_v10  ;;  %v3737_v5 = vld [vmem:[#allocation6 + $0x7] ss:$8 sm:$0xf] }
 0x27e   : > { %4462 = vst [vmem:[#allocation30_spill] sm:$0xff] %v3697_v14  ;;  %4463 = vst [vmem:[#allocation31_spill] sm:$0xff] %v3700_v61  ;;  %1525 = vmatprep.subr.bf16.mxu0 %v3697_v14  ;;  %1567 = vmatpush1.bf16.msra.mxu1 %v3700_v61  ;;  %v1107_v23 = vrot.slane %v1090_v28, %v3313_v9  ;;  %v1103_v21 = vrot.slane %v1090_v28, %v3319_v15 }
 0x27f   : > { %v1123_v45 = vpop.permute.xlu1 %1122  ;;  %1526 = vmatpush1.bf16.msra.mxu0 %v3711_v35  ;;  %v3719_v43 = vpop.permute.xlu0 %1204  ;;  %v1154_v36 = vmul.f32 %v1137_v34, %v1131_v41  ;;  %v1161_v47 = vpack.c.bf16 %v1157_v59, %v1157_v59  ;;  %v1191_v28 = vrot.slane %v3713_v3, %v3313_v9  ;;  %v1263_v14 = vrot.slane %v3737_v5, %v3315_v10 }
 0x280   : > { %v1129_v44 = vsel %vm523_vm3, %v1123_v45, %v3647_v20  ;;  %v1130_v48 = vsel %vm523_vm3, %v3650_v29, %v1123_v45  ;;  %v1183_v20 = vrot.slane %v3713_v3, %v3317_v11  ;;  %v1187_v29 = vrot.slane %v3713_v3, %v3319_v15  ;;  %v3747_v45 = vld [vmem:[#allocation6 + $0x6] ss:$8 sm:$0xf] }
 0x281   : > { %v1155_v63 = vmul.f32 %v1141_v42, %v1130_v48  ;;  %v1156_v33 = vmul.f32 %v1145_v32, %v1129_v44  ;;  %v1267_v34 = vrot.slane %v3737_v5, %v3317_v11  ;;  %v1271_v41 = vrot.slane %v3737_v5, %v3319_v15 }
 0x282   : > { %v1275_v3 = vrot.slane %v3737_v5, %v3313_v9  ;;  %v1158_v30 = vpack.c.bf16 %v1154_v36, %v1154_v36  ;;  %v1345_v57 = vrot.slane %v1161_v47, 4 }
 0x283   : > { %v1085_v35 = vpop.permute.xlu1 %1084  ;;  %v3749_v61 = vpop.permute.xlu0 %1288  ;;  %v1159_v27 = vpack.c.bf16 %v1155_v63, %v1155_v63  ;;  %v1160_v25 = vpack.c.bf16 %v1156_v33, %v1156_v33 }
 0x284   : > { %v1086_v42 = vsel %vm479_vm4, %v3656_v37, %v1085_v35  ;;  %v1089_v32 = vsel %vm479_vm4, %v1085_v35, %v3667_v4 }
 0x285   : > { %v1112_v59 = vmul.f32 %v1095_v58, %v1089_v32  ;;  %v1115_v44 = vmul.f32 %v1107_v23, %v1086_v42  ;;  %v1344_v58 = vrot.slane %v1160_v25, 4 }
 0x287   : > { %v1116_v22 = vpack.c.bf16 %v1112_v59, %v1112_v59  ;;  %v1119_v54 = vpack.c.bf16 %v1115_v44, %v1115_v44  ;;  %v1081_v53 = vpop.permute.xlu1 %1080  ;;  %v1165_v51 = vpop.permute.xlu0 %1164  ;;  %v1342_v59 = vrot.slane %v1158_v30, 4  ;;  %v1343_v44 = vrot.slane %v1159_v27, 4 }
 0x288   : > { %v1087_v23 = vsel %vm479_vm4, %v1081_v53, %v3656_v37  ;;  %v1088_v5 = vsel %vm479_vm4, %v3667_v4, %v1081_v53  ;;  %v1171_v36 = vsel %vm567_vm5, %v1165_v51, %v3641_v62  ;;  %v1172_v47 = vsel %vm567_vm5, %v3675_v0, %v1165_v51 }
 0x289   : > { %v1113_v63 = vmul.f32 %v1099_v46, %v1088_v5  ;;  %v1114_v33 = vmul.f32 %v1103_v21, %v1087_v23  ;;  %v1196_v42 = vmul.f32 %v1179_v1, %v1172_v47  ;;  %v1197_v32 = vmul.f32 %v1183_v20, %v1171_v36  ;;  %v3806_v1 = vld [vmem:[#allocation6 + $0x20] ss:$8 sm:$0xf] }
 0x28a   : > { %v3788_v37 = vsel %vm767_vm2, %v1119_v54, %v1345_v57  ;;  %v3804_v21 = vsel %vm767_vm2, %v1116_v22, %v1342_v59  ;;  %v4465_v59 = vrot.slane %v3747_v45, %v3315_v10 }
 0x28b   : > { %v1117_v35 = vpack.c.bf16 %v1113_v63, %v1113_v63  ;;  %v1118_v4 = vpack.c.bf16 %v1114_v33, %v1114_v33  ;;  %v1200_v53 = vpack.c.bf16 %v1196_v42, %v1196_v42  ;;  %v1201_v26 = vpack.c.bf16 %v1197_v32, %v1197_v32  ;;  %1568 = vmatprep.subr.bf16.mxu1 %v3788_v37  ;;  %v1169_v48 = vpop.permute.xlu1 %1168  ;;  %v1249_v38 = vpop.permute.xlu0 %1248 }
 0x28c   : > { %v1170_v51 = vsel %vm567_vm5, %v3641_v62, %v1169_v48  ;;  %v1173_v27 = vsel %vm567_vm5, %v1169_v48, %v3675_v0  ;;  %v1255_v54 = vsel %vm655_vm6, %v1249_v38, %v3643_v6  ;;  %v1256_v57 = vsel %vm655_vm6, %v3686_v24, %v1249_v38 }
 0x28d   : > { %v1351_v25 = vrot.slane %v1201_v26, 4  ;;  %v1198_v30 = vmul.f32 %v1187_v29, %v1170_v51  ;;  %v1199_v46 = vmul.f32 %v1191_v28, %v1173_v27  ;;  %v1280_v62 = vmul.f32 %v1263_v14, %v1256_v57 }
 0x28e   : > { %v1281_v20 = vmul.f32 %v1267_v34, %v1255_v54  ;;  %v3809_v0 = vsel %vm767_vm2, %v1117_v35, %v1343_v44  ;;  %v3812_v48 = vsel %vm767_vm2, %v1118_v4, %v1344_v58  ;;  %v1350_v14 = vrot.slane %v1200_v53, 4 }
 0x28f   : > { %v1202_v23 = vpack.c.bf16 %v1198_v30, %v1198_v30  ;;  %v1203_v5 = vpack.c.bf16 %v1199_v46, %v1199_v46  ;;  %1527 = vmatprep.subr.bf16.mxu0 %v3809_v0  ;;  %1569 = vmatpush1.bf16.msra.mxu1 %v3812_v48  ;;  %v1253_v38 = vpop.permute.xlu1 %1252  ;;  %v1207_v26 = vpop.permute.xlu0 %1206  ;;  %v3818_v22 = vsel %vm767_vm2, %v3704_v31, %v1351_v25 }
 0x290   : > { %v1254_v29 = vsel %vm655_vm6, %v3643_v6, %v1253_v38  ;;  %v1257_v28 = vsel %vm655_vm6, %v1253_v38, %v3686_v24  ;;  %1528 = vmatpush1.bf16.msra.mxu0 %v3804_v21  ;;  %v1317_v34 = vrot.slane %v3806_v1, %v3313_v9  ;;  %v1284_v35 = vpack.c.bf16 %v1280_v62, %v1280_v62 }
 0x291   : > { %v1285_v58 = vpack.c.bf16 %v1281_v20, %v1281_v20  ;;  %v1282_v36 = vmul.f32 %v1271_v41, %v1254_v29  ;;  %v1283_v47 = vmul.f32 %v1275_v3, %v1257_v28  ;;  %1529 = vmatprep.subr.bf16.mxu0 %v3818_v22  ;;  %v1352_v63 = vrot.slane %v1202_v23, 4 }
 0x292   : > { %v1353_v33 = vrot.slane %v1203_v5, 4  ;;  %v1213_v6 = vsel %vm611_vm7, %v1207_v26, %v3645_v16  ;;  %v1214_v24 = vsel %vm611_vm7, %v3719_v43, %v1207_v26  ;;  %v4466_v41 = vrot.slane %v3747_v45, %v3317_v11 }
 0x293   : > { %v1286_v42 = vpack.c.bf16 %v1282_v36, %v1282_v36  ;;  %v1287_v32 = vpack.c.bf16 %v1283_v47, %v1283_v47  ;;  %v1238_v44 = vmul.f32 %v4465_v59, %v1214_v24  ;;  %v1211_v4 = vpop.permute.xlu1 %1210  ;;  %v1295_v53 = vpop.permute.xlu0 %1294  ;;  %v3853_v57 = vsel %vm767_vm2, %v3693_v2, %v1350_v14 }
 0x294   : > { %v1239_v3 = vmul.f32 %v4466_v41, %v1213_v6  ;;  %v1212_v51 = vsel %vm611_vm7, %v3645_v16, %v1211_v4  ;;  %v1215_v27 = vsel %vm611_vm7, %v1211_v4, %v3719_v43  ;;  %v1299_v54 = vsel %vm699_vm8, %v1295_v53, %v3749_v61  ;;  %1530 = vmatpush1.bf16.msra.mxu0 %v3853_v57 }
 0x295   : > { %v1358_v25 = vrot.slane %v1284_v35, 4  ;;  %v1359_v30 = vrot.slane %v1285_v58, 4  ;;  %v1242_v46 = vpack.c.bf16 %v1238_v44, %v1238_v44  ;;  %v4467_v16 = vrot.slane %v3747_v45, %v3319_v15 }
 0x296   : > { %v1243_v62 = vpack.c.bf16 %v1239_v3, %v1239_v3  ;;  %v4468_v43 = vrot.slane %v3747_v45, %v3313_v9  ;;  %v3864_v5 = vsel %vm767_vm2, %v3723_v60, %v1353_v33  ;;  %v1313_v38 = vrot.slane %v3806_v1, %v3319_v15 }
 0x297   : > { %v1240_v20 = vmul.f32 %v4467_v16, %v1212_v51  ;;  %v1325_v26 = vmul.f32 %v1317_v34, %v1299_v54  ;;  %1570 = vmatprep.subr.bf16.mxu1 %v3864_v5  ;;  %v3871_v14 = vsel %vm767_vm2, %v3727_v39, %v1352_v63  ;;  %v1293_v28 = vpop.permute.xlu1 %1292  ;;  %v3877_v45 = vsel %vm767_vm2, %v1242_v46, %v1358_v25 }
 0x298   : > { %v1241_v23 = vmul.f32 %v4468_v43, %v1215_v27  ;;  %v3874_v29 = vsel %vm767_vm2, %v1243_v62, %v1359_v30  ;;  %v1360_v35 = vrot.slane %v1286_v42, 4  ;;  %v1361_v58 = vrot.slane %v1287_v32, 4  ;;  %1571 = vmatpush1.bf16.msra.mxu1 %v3871_v14 }
 0x299   : > { %v1244_v36 = vpack.c.bf16 %v1240_v20, %v1240_v20  ;;  %1531 = vmatprep.subr.bf16.mxu0 %v3874_v29  ;;  %v1296_v34 = vsel %vm699_vm8, %v1293_v28, %v1295_v53  ;;  %v1305_v63 = vrot.slane %v3806_v1, %v3315_v10  ;;  %v1309_v33 = vrot.slane %v3806_v1, %v3317_v11 }
 0x29a   : > { %v1245_v47 = vpack.c.bf16 %v1241_v23, %v1241_v23  ;;  %1532 = vmatpush1.bf16.msra.mxu0 %v3877_v45  ;;  %v1324_v6 = vmul.f32 %v1313_v38, %v1296_v34  ;;  %v1329_v32 = vpack.c.bf16 %v1325_v26, %v1325_v26  ;;  %v2704_v54 = vcombine.low %v3629_v55, %v3629_v55  ;;  %v4480_v55 = vld [vmem:[#allocation31_spill] sm:$0xff] }
 0x29b   : > { %v1420_v42 = vsel %vm767_vm2, %v1244_v36, %v1360_v35  ;;  %v1291_v59 = vpop.permute.xlu1 %1290  ;;  %v4003_v35 = vld [vmem:[%s4401_s4] sm:$0xff]  ;;  %v4483_v34 = vld [vmem:[#allocation27_spill] sm:$0xff] }
 0x29c   : > { %v1424_v24 = vsel %vm767_vm2, %v1245_v47, %v1361_v58  ;;  %v1328_v44 = vpack.c.bf16 %v1324_v6, %v1324_v6  ;;  %v1297_v41 = vsel %vm699_vm8, %v1291_v59, %v1293_v28  ;;  %v1298_v3 = vsel %vm699_vm8, %v3749_v61, %v1291_v59  ;;  %v4481_v61 = vld [vmem:[#allocation32_spill] sm:$0xff]  ;;  %v2868_v36 = vld [vmem:[%s4402_s5] sm:$0xff] }
 0x29d   : > { %1572 = vmatprep.subr.bf16.mxu1 %v1424_v24  ;;  %v1322_v4 = vmul.f32 %v1305_v63, %v1298_v3  ;;  %v1323_v53 = vmul.f32 %v1309_v33, %v1297_v41  ;;  %v2709_v58 = vcombine.high %v4003_v35, %v4003_v35  ;;  %v4482_v47 = vmov 0   ;;  %v4029_v63 = vld [vmem:[%s3216_s20 + $0x10] sm:$0xff]  ;;  %v4032_v33 = vld [vmem:[%s3216_s20 + $0x18] sm:$0xff] }
 0x29e   : > { %1573 = vmatpush1.bf16.msra.mxu1 %v1420_v42  ;;  %v1433_v1 = vsel %vm767_vm2, %v1328_v44, 0  ;;  %v374_v6 = vadd.f32 %v4032_v33, %v4029_v63 }
 0x29f   : > { %2730 = vmatprep.subr.msk.bf16.mxu1 %vm767_vm2, %v1329_v32  ;;  %v1326_v51 = vpack.c.bf16 %v1322_v4, %v1322_v4  ;;  %v1327_v27 = vpack.c.bf16 %v1323_v53, %v1323_v53 }
 0x2a1   : > { %2728 = vmatprep.subr.msk.bf16.mxu0 %vm767_vm2, %v1327_v27  ;;  %v1427_v25 = vsel %vm767_vm2, %v1326_v51, 0 }
 0x2a2   : > { %1575 = vmatpush1.bf16.msra.mxu1 %v1433_v1  ;;  %1534 = vmatpush1.bf16.msra.mxu0 %v1427_v25 }
 0x2a3   : > { %2195 = vmatprep.subr.bf16.mxu1 %v3349_v56  ;;  %2154 = vmatprep.subr.bf16.mxu0 %v3356_v7  ;;  %v4469_v56 = vld [vmem:[#allocation19_spill] sm:$0xff]  ;;  %v4470_v7 = vld [vmem:[#allocation18_spill] sm:$0xff] }
 0x2a5   : > { %1589 = vmatmul.mubr.bf16.vlgmr.msra.gmra.mrb[4].mxu1 %v2704_v54  ;;  %1548 = vmatmul.mubr.bf16.vlgmr.msra.gmra.mrb[4].mxu0 %v2704_v54  ;;  %v4054_v54 = vld [vmem:[#allocation6] ss:$8 sm:$0xf] }
 0x2a6   : > { %2196 = vmatpush1.bf16.msra.mxu1 %v3359_v12  ;;  %2155 = vmatpush1.bf16.msra.mxu0 %v3362_v13  ;;  %v4471_v12 = vld [vmem:[#allocation20_spill] sm:$0xff]  ;;  %v4473_v13 = vld [vmem:[#allocation23_spill] sm:$0xff] }
 0x2a7   : > { %2197 = vmatprep.subr.bf16.mxu1 %v3392_v52  ;;  %2156 = vmatprep.subr.bf16.mxu0 %v3401_v17  ;;  %v4472_v52 = vld [vmem:[#allocation21_spill] sm:$0xff]  ;;  %v4474_v17 = vld [vmem:[#allocation22_spill] sm:$0xff] }
 0x2a8   : > { %2711 = vmatprep.mubr.msk.bf16.mxu1 %vm2150_vm11, %v2709_v58  ;;  %2710 = vmatprep.mubr.msk.bf16.mxu0 %vm2150_vm11, %v2709_v58 }
 0x2aa   : > { %2198 = vmatpush1.bf16.msra.mxu1 %v3404_v18  ;;  %2157 = vmatpush1.bf16.msra.mxu0 %v3407_v19  ;;  %v4475_v18 = vld [vmem:[#allocation24_spill] sm:$0xff]  ;;  %v4476_v19 = vld [vmem:[#allocation26_spill] sm:$0xff] }
 0x2ab   : > { %2199 = vmatprep.subr.bf16.mxu1 %v3438_v40  ;;  %2158 = vmatprep.subr.bf16.mxu0 %v3448_v49  ;;  %v4477_v40 = vld [vmem:[#allocation29_spill] sm:$0xff] }
 0x2ac   : > { %v4478_v49 = vld [vmem:[#allocation25_spill] sm:$0xff] }
 0x2ae   : > { %2200 = vmatpush1.bf16.msra.mxu1 %v3452_v50  ;;  %2159 = vmatpush1.bf16.msra.mxu0 %v4470_v7  ;;  %v4479_v50 = vld [vmem:[#allocation30_spill] sm:$0xff] }
 0x2af   : > { %2201 = vmatprep.subr.bf16.mxu1 %v4469_v56  ;;  %2160 = vmatprep.subr.bf16.mxu0 %v4471_v12 }
 0x2b2   : > { %2202 = vmatpush1.bf16.msra.mxu1 %v4472_v52  ;;  %2161 = vmatpush1.bf16.msra.mxu0 %v4474_v17  ;;  %v1642_v52 = vrot.slane %v4054_v54, %v3313_v9 }
 0x2b3   : > { %2734 = vmatprep.subr.msk.bf16.mxu1 %vm767_vm2, %v4473_v13  ;;  %2731 = vmatprep.subr.msk.bf16.mxu0 %vm767_vm2, %v4475_v18 }
 0x2b6   : > { %2204 = vmatpush1.bf16.msra.mxu1 %v4476_v19  ;;  %2163 = vmatpush1.bf16.msra.mxu0 %v4478_v49 }
 0x2b7   : > { %2205 = vmatprep.subr.bf16.mxu1 %v4477_v40  ;;  %2164 = vmatprep.subr.bf16.mxu0 %v4479_v50 }
 0x2ba   : > { %2206 = vmatpush1.bf16.msra.mxu1 %v4480_v55  ;;  %2165 = vmatpush1.bf16.msra.mxu0 %v4481_v61  ;;  %v4079_v61 = vld [vmem:[#allocation6 + $0x3] ss:$8 sm:$0xf] }
 0x2bb   : > { %2207 = vmatprep.subr.bf16.mxu1 %v3788_v37  ;;  %2166 = vmatprep.subr.bf16.mxu0 %v3809_v0  ;;  %v3017_v37 = vmov 2  }
 0x2bc   : > { %2843 = vset.pattern.permute.xlu0 %v3017_v37 }
 0x2be   : > { %2208 = vmatpush1.bf16.msra.mxu1 %v3812_v48  ;;  %2167 = vmatpush1.bf16.msra.mxu0 %v3804_v21  ;;  %v1503_v21 = vpop.permute.xlu0 %1502 }
 0x2bf   : > { %2209 = vmatprep.subr.bf16.mxu1 %v3864_v5  ;;  %2168 = vmatprep.subr.bf16.mxu0 %v3818_v22 }
 0x2c2   : > { %2210 = vmatpush1.bf16.msra.mxu1 %v3871_v14  ;;  %2169 = vmatpush1.bf16.msra.mxu0 %v3853_v57 }
 0x2c3   : > { %2211 = vmatprep.subr.bf16.mxu1 %v1424_v24  ;;  %2170 = vmatprep.subr.bf16.mxu0 %v3874_v29  ;;  %v4037_v24 = vld [vmem:[%s3216_s20] sm:$0xff] }
 0x2c6   : > { %2212 = vmatpush1.bf16.msra.mxu1 %v1420_v42  ;;  %2171 = vmatpush1.bf16.msra.mxu0 %v3877_v45  ;;  %v4040_v42 = vld [vmem:[%s3216_s20 + $0x8] sm:$0xff]  ;;  %s3023_s20 = smov [#allocation8]  }
 0x2c7   : > { %2735 = vmatprep.subr.msk.bf16.mxu1 %vm767_vm2, %v1329_v32  ;;  %2732 = vmatprep.subr.msk.bf16.mxu0 %vm767_vm2, %v1327_v27  ;;  %v369_v32 = vadd.f32 %v4040_v42, %v4037_v24  ;;  %v4052_v27 = vld [vmem:[#allocation6 + $0x1] ss:$8 sm:$0xf] }
 0x2c8   : > { %v1684_v13 = vrot.slane %v4052_v27, %v3313_v9 }
 0x2ca   : > { %2214 = vmatpush1.bf16.msra.mxu1 %v1433_v1  ;;  %2173 = vmatpush1.bf16.msra.mxu0 %v1427_v25  ;;  %v1680_v25 = vrot.slane %v4052_v27, %v3319_v15 }
 0x378   : > { %v1590_v0 = vpop.f32.mrb[4].mxu1  ;;  %v1549_v46 = vpop.f32.mrb[4].mxu0 }
 0x379   : > { %v1591_v48 = vadd.f32 %v1590_v0, %v1503_v21  ;;  %v1592_v22 = vpop.f32.mrb[5].mxu1  ;;  %v1550_v16 = vadd.f32 %v1549_v46, %v1503_v21  ;;  %v1551_v43 = vpop.f32.mrb[5].mxu0  ;;  %v4083_v0 = vld [vmem:[#allocation6 + $0x2] ss:$8 sm:$0xf]  ;;  %v1764_v46 = vrot.slane %v4079_v61, %v3319_v15 }
 0x37a   : > { %v1593_v30 = vadd.f32 %v1592_v22, %v1503_v21  ;;  %v1594_v57 = vpop.f32.mrb[6].mxu1  ;;  %v1552_v5 = vadd.f32 %v1551_v43, %v1503_v21  ;;  %v1553_v38 = vpop.f32.mrb[6].mxu0  ;;  %v1638_v21 = vrot.slane %v4054_v54, %v3319_v15  ;;  %v1768_v43 = vrot.slane %v4079_v61, %v3313_v9 }
 0x37b   : > { %v3940_v62 = vmax.f32 %v1591_v48, 0.0  ;;  %v1595_v20 = vpop.f32.mrb[7].mxu1  ;;  %v3944_v26 = vmax.f32 %v1550_v16, 0.0  ;;  %v1554_v14 = vpop.f32.mrb[7].mxu0 }
 0x37c   : > { %v3942_v23 = vmax.f32 %v1593_v30, 0.0  ;;  %v3950_v29 = vmax.f32 %v1552_v5, 0.0  ;;  %v1726_v20 = vrot.slane %v4083_v0, %v3313_v9 }
 0x37d   : > { %1743 = vrot.lane.b32.xlu0 %v3940_v62, %s3009_s26  ;;  %1659 = vrot.lane.b32.xlu1 %v3940_v62, %s3007_s17 }
 0x37e   : > { %v1605_v28 = vadd.f32 %v3942_v23, %v3940_v62  ;;  %v1601_v45 = vadd.f32 %v3950_v29, %v3944_v26 }
 0x381   : > { %1617 = vrot.lane.b32.xlu1 %v3940_v62, %s3008_s15  ;;  %1781 = vrot.lane.b32.xlu0 %v3944_v26, %s3011_s23 }
 0x385   : > { %1701 = vrot.lane.b32.xlu1 %v3940_v62, %s3010_s22  ;;  %1785 = vrot.lane.b32.xlu0 %v3940_v62, %s3011_s23 }
 0x389   : > { %1865 = vrot.lane.b32.xlu1 %v3944_v26, %s3012_s24  ;;  %1657 = vrot.lane.b32.xlu0 %v3950_v29, %s3007_s17 }
 0x38d   : > { %1869 = vrot.lane.b32.xlu1 %v3940_v62, %s3012_s24  ;;  %1619 = vrot.lane.b32.xlu0 %v3942_v23, %s3008_s15 }
 0x391   : > { %1661 = vrot.lane.b32.xlu1 %v3942_v23, %s3007_s17  ;;  %1741 = vrot.lane.b32.xlu0 %v3950_v29, %s3009_s26 }
 0x395   : > { %1615 = vrot.lane.b32.xlu1 %v3950_v29, %s3008_s15  ;;  %1703 = vrot.lane.b32.xlu0 %v3942_v23, %s3010_s22 }
 0x399   : > { %1745 = vrot.lane.b32.xlu1 %v3942_v23, %s3009_s26  ;;  %1823 = vrot.lane.b32.xlu0 %v3944_v26, %s3013_s14 }
 0x39d   : > { %1699 = vrot.lane.b32.xlu1 %v3950_v29, %s3010_s22  ;;  %1871 = vrot.lane.b32.xlu0 %v3942_v23, %s3012_s24 }
 0x3a1   : > { %1787 = vrot.lane.b32.xlu1 %v3942_v23, %s3011_s23  ;;  %1827 = vrot.lane.b32.xlu0 %v3940_v62, %s3013_s14 }
 0x3a5   : > { %1829 = vrot.lane.b32.xlu1 %v3942_v23, %s3013_s14  ;;  %1911 = vrot.lane.b32.xlu0 %v3940_v62, %s3015_s19 }
 0x3a9   : > { %1907 = vrot.lane.b32.xlu1 %v3944_v26, %s3015_s19  ;;  %1655 = vrot.lane.b32.xlu0 %v3944_v26, %s3007_s17 }
 0x3ad   : > { %1913 = vrot.lane.b32.xlu1 %v3942_v23, %s3015_s19  ;;  %1739 = vrot.lane.b32.xlu0 %v3944_v26, %s3009_s26 }
 0x3b1   : > { %1613 = vrot.lane.b32.xlu1 %v3944_v26, %s3008_s15  ;;  %1783 = vrot.lane.b32.xlu0 %v3950_v29, %s3011_s23  ;;  %s2935_s15 = sshll.u32 %s3023_s20, 4  ;;  %s2936_s15 = int_to_ptr.vmem [resolvable:$false] %s2935_s15 }
 0x3b5   : > { %1697 = vrot.lane.b32.xlu1 %v3944_v26, %s3010_s22  ;;  %1825 = vrot.lane.b32.xlu0 %v3950_v29, %s3013_s14  ;;  %s2724_s14 = sshll.u32 %s3095_s13, 9  ;;  %s2937_s22 = scalar_lea.vmem %s2936_s15, 1024 }
 0x3b6   : > { %s4353_s13 = scalar_lea.hbm %s4406_s9, %s2724_s14 }
 0x3b9   : > { %1867 = vrot.lane.b32.xlu1 %v3950_v29, %s3012_s24  ;;  %2141 = vperm.xlu0 %2843, %v2868_v36  }
 0x3bd   : > { %1909 = vrot.lane.b32.xlu1 %v3950_v29, %s3015_s19  ;;  %2856 = vset.pattern.permute.xlu0 %v4482_v47  ;;  %s363_s19 = scalar_lea.vmem [#allocation8], %s2699_s27  ;;  %s2597_s27 = scalar_lea.sflag [#allocation5], %s3210_s25 }
 0x3be   : > { %s2611_s16 = sshll.u32 %s363_s19, 4  ;;  %s4355_s16 = int_to_ptr.vmem [resolvable:$true] %s2611_s16 }
 0x3bf   : > { %s2931_s18 = scalar_lea.vmem %s4355_s16, 512  ;;  %p2938_p10 = scmp.lt.s32.totalorder %s4355_s16, %s2936_s15 }
 0x3c0   : > { %p2932_p4 = scmp.ne.s32.totalorder %s4355_s16, %s2931_s18  ;;  %p2939_p13 = scmp.lt.s32.totalorder %s2937_s22, %s2931_s18 }
 0x3c2   : > { %p2933_p6 = pnand %p2932_p4, %p3165_p12  ;;  %p2940_p3 = por %p2939_p13, %p2938_p10 }
 0x3c4   : > { %p2934_p8 = pneg %p2933_p6 }
 0x3c6   : > { %p2941_p7 = pnand %p2940_p3, %p2934_p8 }
 0x3d8   : > { %987 = vadd.xlane.f32.xlu0 %v4483_v34 }
 0x3e1   : > { %375 = vadd.xlane.f32.xlu1 %v374_v6 }
 0x3e5   : > { %1606 = vadd.xlane.f32.xlu1 %v1605_v28 }
 0x3e9   : > { %370 = vadd.xlane.f32.xlu1 %v369_v32 }
 0x3ed   : > { %1602 = vadd.xlane.f32.xlu1 %v1601_v45 }
 0x3ef   : > { %v1744_v59 = vpop.permute.xlu0 %1743  ;;  %v1660_v44 = vpop.permute.xlu1 %1659 }
 0x3f3   : > { %v1618_v41 = vpop.permute.xlu1 %1617  ;;  %v4044_v3 = vpop.permute.xlu0 %1781 }
 0x3f7   : > { %v1702_v4 = vpop.permute.xlu1 %1701  ;;  %v4046_v53 = vpop.permute.xlu0 %1785 }
 0x3fb   : > { %v4048_v1 = vpop.permute.xlu1 %1865  ;;  %v4050_v51 = vpop.permute.xlu0 %1657 }
 0x3fc   : > { %v1664_v12 = vsel %vm435_vm0, %v4050_v51, %v1660_v44 }
 0x3fd   : > { %v1691_v18 = vmul.f32 %v1680_v25, %v1664_v12  ;;  %v4112_v25 = vld [vmem:[#allocation6 + $0x7] ss:$8 sm:$0xf] }
 0x3ff   : > { %v4058_v56 = vpop.permute.xlu1 %1869  ;;  %v4060_v7 = vpop.permute.xlu0 %1619  ;;  %v1695_v48 = vpack.c.bf16 %v1691_v18, %v1691_v18  ;;  %v4117_v18 = vld [vmem:[#allocation6 + $0x5] ss:$8 sm:$0xf] }
 0x400   : > { %v1621_v17 = vsel %vm392_vm1, %v1618_v41, %v4060_v7 }
 0x401   : > { %v1650_v50 = vmul.f32 %v1642_v52, %v1621_v17  ;;  %v1955_v58 = vrot.slane %v1695_v48, 4  ;;  %v1722_v17 = vrot.slane %v4083_v0, %v3319_v15 }
 0x403   : > { %v4072_v19 = vpop.permute.xlu1 %1661  ;;  %v4074_v40 = vpop.permute.xlu0 %1741  ;;  %v1654_v5 = vpack.c.bf16 %v1650_v50, %v1650_v50 }
 0x404   : > { %v1663_v49 = vsel %vm435_vm0, %v1660_v44, %v4072_v19  ;;  %v1748_v14 = vsel %vm523_vm3, %v4074_v40, %v1744_v59 }
 0x405   : > { %v1692_v55 = vmul.f32 %v1684_v13, %v1663_v49  ;;  %v1775_v44 = vmul.f32 %v1764_v46, %v1748_v14  ;;  %v1806_v46 = vrot.slane %v4117_v18, %v3319_v15  ;;  %v4135_v14 = vld [vmem:[#allocation6 + $0x6] ss:$8 sm:$0xf] }
 0x407   : > { %v1696_v22 = vpack.c.bf16 %v1692_v55, %v1692_v55  ;;  %v4085_v30 = vpop.permute.xlu1 %1615  ;;  %v4087_v57 = vpop.permute.xlu0 %1703  ;;  %v1894_v55 = vrot.slane %v4112_v25, %v3313_v9 }
 0x408   : > { %v1622_v16 = vsel %vm392_vm1, %v4085_v30, %v1618_v41  ;;  %v1705_v45 = vsel %vm479_vm4, %v1702_v4, %v4087_v57 }
 0x409   : > { %v1956_v38 = vrot.slane %v1696_v22, 4  ;;  %v1649_v28 = vmul.f32 %v1638_v21, %v1622_v16  ;;  %v1734_v12 = vmul.f32 %v1726_v20, %v1705_v45  ;;  %v1779_v21 = vpack.c.bf16 %v1775_v44, %v1775_v44 }
 0x40b   : > { %v1653_v36 = vpack.c.bf16 %v1649_v28, %v1649_v28  ;;  %v4104_v34 = vpop.permute.xlu1 %1745  ;;  %v4106_v6 = vpop.permute.xlu0 %1823  ;;  %v1995_v32 = vsel %vm767_vm2, %v1654_v5, %v1956_v38  ;;  %v1738_v16 = vpack.c.bf16 %v1734_v12, %v1734_v12  ;;  %v1810_v5 = vrot.slane %v4117_v18, %v3313_v9 }
 0x40c   : > { %v1747_v41 = vsel %vm523_vm3, %v1744_v59, %v4104_v34  ;;  %2215 = vmatprep.subr.bf16.mxu1 %v1995_v32  ;;  %v1890_v38 = vrot.slane %v4112_v25, %v3319_v15  ;;  %v1963_v44 = vrot.slane %v1779_v21, 4 }
 0x40d   : > { %v1776_v52 = vmul.f32 %v1768_v43, %v1747_v41  ;;  %v1991_v13 = vsel %vm767_vm2, %v1653_v36, %v1955_v58 }
 0x40e   : > { %2216 = vmatpush1.bf16.msra.mxu1 %v1991_v13 }
 0x40f   : > { %v1780_v49 = vpack.c.bf16 %v1776_v52, %v1776_v52  ;;  %v4119_v50 = vpop.permute.xlu1 %1699  ;;  %v1872_v59 = vpop.permute.xlu0 %1871 }
 0x410   : > { %v1706_v48 = vsel %vm479_vm4, %v4119_v50, %v1702_v4  ;;  %v1876_v22 = vsel %vm655_vm6, %v1872_v59, %v4048_v1  ;;  %v1873_v4 = vsel %vm655_vm6, %v4058_v56, %v1872_v59 }
 0x411   : > { %v1964_v20 = vrot.slane %v1780_v49, 4  ;;  %v1733_v43 = vmul.f32 %v1722_v17, %v1706_v48  ;;  %v1902_v45 = vmul.f32 %v1894_v55, %v1876_v22  ;;  %v1848_v17 = vrot.slane %v4135_v14, %v3319_v15 }
 0x412   : > { %v1852_v49 = vrot.slane %v4135_v14, %v3313_v9  ;;  %v1901_v55 = vmul.f32 %v1890_v38, %v1873_v4  ;;  %v4165_v38 = vpack.c.bf16 %v3942_v23, %v3942_v23 }
 0x413   : > { %v1737_v28 = vpack.c.bf16 %v1733_v43, %v1733_v43  ;;  %v1788_v58 = vpop.permute.xlu1 %1787  ;;  %v4140_v36 = vpop.permute.xlu0 %1827  ;;  %v2011_v32 = vsel %vm767_vm2, %v1738_v16, %v1964_v20  ;;  %v1906_v21 = vpack.c.bf16 %v1902_v45, %v1902_v45  ;;  %v2259_v43 = vrot.slane %v3723_v60, 4 }
 0x414   : > { %v1789_v41 = vsel %vm567_vm5, %v4046_v53, %v1788_v58  ;;  %v1792_v12 = vsel %vm567_vm5, %v1788_v58, %v4044_v3  ;;  %2217 = vmatprep.subr.bf16.mxu1 %v2011_v32  ;;  %v1905_v32 = vpack.c.bf16 %v1901_v55, %v1901_v55 }
 0x415   : > { %v1817_v52 = vmul.f32 %v1806_v46, %v1789_v41  ;;  %v1818_v13 = vmul.f32 %v1810_v5, %v1792_v12  ;;  %v2007_v59 = vsel %vm767_vm2, %v1737_v28, %v1963_v44  ;;  %v4169_v28 = vpack.c.bf16 %v3940_v62, %v3940_v62  ;;  %v4175_v12 = vld [vmem:[#allocation6 + $0x20] ss:$8 sm:$0xf] }
 0x416   : > { %2218 = vmatpush1.bf16.msra.mxu1 %v2007_v59  ;;  %v1672_v44 = vrot.slane %v4052_v27, %v3315_v10  ;;  %v1676_v41 = vrot.slane %v4052_v27, %v3317_v11 }
 0x417   : > { %v1821_v48 = vpack.c.bf16 %v1817_v52, %v1817_v52  ;;  %v1822_v22 = vpack.c.bf16 %v1818_v13, %v1818_v13  ;;  %v1830_v16 = vpop.permute.xlu1 %1829  ;;  %v4154_v20 = vpop.permute.xlu0 %1911  ;;  %v1980_v52 = vrot.slane %v1906_v21, 4  ;;  %v2258_v21 = vrot.slane %v3727_v39, 4 }
 0x418   : > { %v1831_v46 = vsel %vm611_vm7, %v4140_v36, %v1830_v16  ;;  %v1834_v5 = vsel %vm611_vm7, %v1830_v16, %v4106_v6  ;;  %v1936_v16 = vrot.slane %v4175_v12, %v3313_v9  ;;  %v1634_v9 = vrot.slane %v4054_v54, %v3317_v11 }
 0x419   : > { %v1971_v4 = vrot.slane %v1821_v48, 4  ;;  %v1972_v45 = vrot.slane %v1822_v22, 4  ;;  %v1859_v58 = vmul.f32 %v1848_v17, %v1831_v46  ;;  %v1860_v60 = vmul.f32 %v1852_v49, %v1834_v5  ;;  %v4484_v46 = vld [vmem:[#allocation14_spill] sm:$0xff] }
 0x41a   : > { %v1932_v22 = vrot.slane %v4175_v12, %v3319_v15  ;;  %v2278_v5 = vsel %vm767_vm2, %v4484_v46, %v2259_v43  ;;  %v1630_v15 = vrot.slane %v4054_v54, %v3315_v10  ;;  %v1798_v43 = vrot.slane %v4117_v18, %v3315_v10 }
 0x41b   : > { %v1864_v23 = vpack.c.bf16 %v1860_v60, %v1860_v60  ;;  %v4177_v13 = vpop.permute.xlu1 %1907  ;;  %v1656_v59 = vpop.permute.xlu0 %1655  ;;  %v2027_v62 = vsel %vm767_vm2, %v4165_v38, %v1972_v45  ;;  %v2023_v17 = vsel %vm767_vm2, %v4169_v28, %v1971_v4  ;;  %v1863_v49 = vpack.c.bf16 %v1859_v58, %v1859_v58 }
 0x41c   : > { %v1665_v55 = vsel %vm435_vm0, %v1656_v59, %v4050_v51  ;;  %v1666_v27 = vsel %vm435_vm0, %v4072_v19, %v1656_v59  ;;  %2219 = vmatprep.subr.bf16.mxu1 %v2027_v62  ;;  %v1979_v51 = vrot.slane %v1905_v32, 4  ;;  %v1756_v19 = vrot.slane %v4079_v61, %v3315_v10 }
 0x41d   : > { %2220 = vmatpush1.bf16.msra.mxu1 %v2023_v17  ;;  %v2043_v48 = vsel %vm767_vm2, %v1864_v23, %v1980_v52  ;;  %v1689_v4 = vmul.f32 %v1672_v44, %v1666_v27  ;;  %v1760_v45 = vrot.slane %v4079_v61, %v3317_v11  ;;  %v1690_v58 = vmul.f32 %v1676_v41, %v1665_v55 }
 0x41e   : > { %2221 = vmatprep.subr.bf16.mxu1 %v2043_v48  ;;  %v2039_v41 = vsel %vm767_vm2, %v1863_v49, %v1979_v51  ;;  %v1802_v62 = vrot.slane %v4117_v18, %v3317_v11  ;;  %v1714_v27 = vrot.slane %v4083_v0, %v3315_v10 }
 0x41f   : > { %v1914_v60 = vpop.permute.xlu1 %1913  ;;  %v1740_v52 = vpop.permute.xlu0 %1739  ;;  %v1693_v17 = vpack.c.bf16 %v1689_v4, %v1689_v4  ;;  %v1694_v48 = vpack.c.bf16 %v1690_v58, %v1690_v58 }
 0x420   : > { %v1915_v32 = vsel %vm699_vm8, %v4154_v20, %v1914_v60  ;;  %v1918_v61 = vsel %vm699_vm8, %v1914_v60, %v4177_v13  ;;  %v1749_v44 = vsel %vm523_vm3, %v1740_v52, %v4074_v40  ;;  %v1750_v54 = vsel %vm523_vm3, %v4104_v34, %v1740_v52 }
 0x421   : > { %v1943_v23 = vmul.f32 %v1932_v22, %v1915_v32  ;;  %v1944_v59 = vmul.f32 %v1936_v16, %v1918_v61  ;;  %2222 = vmatpush1.bf16.msra.mxu1 %v2039_v41  ;;  %v1774_v55 = vmul.f32 %v1760_v45, %v1749_v44  ;;  %v1718_v40 = vrot.slane %v4083_v0, %v3317_v11 }
 0x422   : > { %v1844_v34 = vrot.slane %v4135_v14, %v3317_v11  ;;  %v1773_v51 = vmul.f32 %v1756_v19, %v1750_v54  ;;  %v4236_v0 = vcombine.low %v4003_v35, %v4003_v35  ;;  %v1954_v35 = vrot.slane %v1694_v48, 4 }
 0x423   : > { %v1947_v49 = vpack.c.bf16 %v1943_v23, %v1943_v23  ;;  %v1948_v22 = vpack.c.bf16 %v1944_v59, %v1944_v59  ;;  %v1614_v16 = vpop.permute.xlu1 %1613  ;;  %v1784_v46 = vpop.permute.xlu0 %1783  ;;  %v1778_v52 = vpack.c.bf16 %v1774_v55, %v1774_v55 }
 0x424   : > { %v1623_v18 = vsel %vm392_vm1, %v1614_v16, %v4085_v30  ;;  %v1624_v4 = vsel %vm392_vm1, %v4060_v7, %v1614_v16  ;;  %v1790_v60 = vsel %vm567_vm5, %v1784_v46, %v4046_v53  ;;  %v1791_v19 = vsel %vm567_vm5, %v4044_v3, %v1784_v46 }
 0x425   : > { %v1647_v45 = vmul.f32 %v1630_v15, %v1624_v4  ;;  %v1648_v58 = vmul.f32 %v1634_v9, %v1623_v18  ;;  %2736 = vmatprep.subr.msk.bf16.mxu1 %vm767_vm2, %v1948_v22  ;;  %v1953_v30 = vrot.slane %v1693_v17, 4  ;;  %v1816_v32 = vmul.f32 %v1802_v62, %v1790_v60 }
 0x426   : > { %v1886_v7 = vrot.slane %v4112_v25, %v3317_v11  ;;  %v2052_v9 = vsel %vm767_vm2, %v1947_v49, 0  ;;  %v1777_v53 = vpack.c.bf16 %v1773_v51, %v1773_v51  ;;  %v1815_v23 = vmul.f32 %v1798_v43, %v1791_v19  ;;  %v4485_v43 = vld [vmem:[#allocation16_spill] sm:$0xff] }
 0x427   : > { %v1651_v61 = vpack.c.bf16 %v1647_v45, %v1647_v45  ;;  %v1652_v15 = vpack.c.bf16 %v1648_v58, %v1648_v58  ;;  %v1698_v44 = vpop.permute.xlu1 %1697  ;;  %v1826_v41 = vpop.permute.xlu0 %1825  ;;  %2224 = vmatpush1.bf16.msra.mxu1 %v2052_v9  ;;  %v1820_v54 = vpack.c.bf16 %v1816_v32, %v1816_v32  ;;  %v1962_v48 = vrot.slane %v1778_v52, 4 }
 0x428   : > { %v1707_v3 = vsel %vm479_vm4, %v1698_v44, %v4119_v50  ;;  %v1708_v59 = vsel %vm479_vm4, %v4087_v57, %v1698_v44  ;;  %2337 = vmatprep.subr.bf16.mxu1 %v2278_v5  ;;  %v1832_v55 = vsel %vm611_vm7, %v1826_v41, %v4140_v36  ;;  %v2275_v49 = vsel %vm767_vm2, %v4485_v43, %v2258_v21 }
 0x429   : > { %v1731_v62 = vmul.f32 %v1714_v27, %v1708_v59  ;;  %v1732_v17 = vmul.f32 %v1718_v40, %v1707_v3  ;;  %v1882_v50 = vrot.slane %v4112_v25, %v3315_v10  ;;  %v1987_v57 = vsel %vm767_vm2, %v1652_v15, %v1954_v35  ;;  %v4486_v3 = vld [vmem:[#allocation15_spill] sm:$0xff] }
 0x42a   : > { %2228 = vmatmul.mubr.bf16.vlgmr.msra.gmra.mrb[8].mxu1 %v4236_v0  ;;  %v1983_v27 = vsel %vm767_vm2, %v1651_v61, %v1953_v30  ;;  %v1961_v40 = vrot.slane %v1777_v53, 4  ;;  %v1819_v36 = vpack.c.bf16 %v1815_v23, %v1815_v23  ;;  %v1858_v46 = vmul.f32 %v1844_v34, %v1832_v55  ;;  %2174 = vmatprep.subr.bf16.mxu0 %v1987_v57 }
 0x42b   : > { %v1735_v22 = vpack.c.bf16 %v1731_v62, %v1731_v62  ;;  %v1736_v16 = vpack.c.bf16 %v1732_v17, %v1732_v17  ;;  %v1868_v5 = vpop.permute.xlu1 %1867  ;;  %2338 = vmatpush1.bf16.msra.mxu1 %v2275_v49  ;;  %v1970_v21 = vrot.slane %v1820_v54, 4  ;;  %2175 = vmatpush1.bf16.msra.mxu0 %v1983_v27  ;;  %v1840_v4 = vrot.slane %v4135_v14, %v3315_v10  ;;  %v4487_v54 = vld [vmem:[#allocation17_spill] sm:$0xff] }
 0x42c   : > { %v1874_v39 = vsel %vm655_vm6, %v1868_v5, %v4058_v56  ;;  %v1875_v25 = vsel %vm655_vm6, %v4048_v1, %v1868_v5  ;;  %2369 = vmatprep.mubr.bf16.mxu1 %v4482_v47  ;;  %v1833_v56 = vsel %vm611_vm7, %v4106_v6, %v1826_v41  ;;  %v1924_v1 = vrot.slane %v4175_v12, %v3315_v10 }
 0x42d   : > { %v1900_v51 = vmul.f32 %v1886_v7, %v1874_v39  ;;  %v2003_v18 = vsel %vm767_vm2, %v1736_v16, %v1962_v48  ;;  %v1899_v45 = vmul.f32 %v1882_v50, %v1875_v25  ;;  %v1999_v34 = vsel %vm767_vm2, %v1735_v22, %v1961_v40 }
 0x42e   : > { %2176 = vmatprep.subr.bf16.mxu0 %v2003_v18  ;;  %v4284_v19 = vpack.c.bf16 %v3950_v29, %v3950_v29  ;;  %v1969_v14 = vrot.slane %v1819_v36, 4  ;;  %v1862_v30 = vpack.c.bf16 %v1858_v46, %v1858_v46  ;;  %v1928_v32 = vrot.slane %v4175_v12, %v3317_v11 }
 0x42f   : > { %v1904_v58 = vpack.c.bf16 %v1900_v51, %v1900_v51  ;;  %v1910_v60 = vpop.permute.xlu1 %1909  ;;  %v1903_v52 = vpack.c.bf16 %v1899_v45, %v1899_v45  ;;  %2177 = vmatpush1.bf16.msra.mxu0 %v1999_v34  ;;  %v1857_v35 = vmul.f32 %v1840_v4, %v1833_v56  ;;  %v4298_v61 = vpack.c.bf16 %v3944_v26, %v3944_v26  ;;  %v4488_v51 = vld [vmem:[#allocation28_spill] sm:$0xff] }
 0x430   : > { %v1916_v6 = vsel %vm699_vm8, %v1910_v60, %v4154_v20  ;;  %v1917_v10 = vsel %vm699_vm8, %v4177_v13, %v1910_v60  ;;  %v2019_v29 = vsel %vm767_vm2, %v4284_v19, %v1970_v21  ;;  %v2257_v53 = vrot.slane %v3704_v31, 4 }
 0x431   : > { %v1978_v7 = vrot.slane %v1904_v58, 4  ;;  %2178 = vmatprep.subr.bf16.mxu0 %v2019_v29  ;;  %v1977_v12 = vrot.slane %v1903_v52, 4  ;;  %v1941_v15 = vmul.f32 %v1924_v1, %v1917_v10  ;;  %v1942_v9 = vmul.f32 %v1928_v32, %v1916_v6 }
 0x432   : > { %v2015_v20 = vsel %vm767_vm2, %v4298_v61, %v1969_v14  ;;  %v1861_v8 = vpack.c.bf16 %v1857_v35, %v1857_v35  ;;  %v2256_v23 = vrot.slane %v3693_v2, 4  ;;  %v2272_v59 = vsel %vm767_vm2, %v4486_v3, %v2257_v53 }
 0x433   : > { %v2035_v11 = vsel %vm767_vm2, %v1862_v30, %v1978_v7  ;;  %2179 = vmatpush1.bf16.msra.mxu0 %v2015_v20  ;;  %v1945_v13 = vpack.c.bf16 %v1941_v15, %v1941_v15  ;;  %v1946_v44 = vpack.c.bf16 %v1942_v9, %v1942_v9  ;;  %v3018_v10 = vmov 0.0|0.0  }
 0x434   : > { %2180 = vmatprep.subr.bf16.mxu0 %v2035_v11  ;;  %v2031_v41 = vsel %vm767_vm2, %v1861_v8, %v1977_v12  ;;  %v2269_v62 = vsel %vm767_vm2, %v4487_v54, %v2256_v23  ;;  %v3020_v12 = vmov 0.0   ;;  %v3021_v8 = vmov 32  }
 0x435   : > { %v2046_v26 = vsel %vm767_vm2, %v1945_v13, 0  ;;  %2854 = vset.pattern.permute.xlu1 %v3021_v8 }
 0x437   : > { %2181 = vmatpush1.bf16.msra.mxu0 %v2031_v41 }
 0x438   : > { %2733 = vmatprep.subr.msk.bf16.mxu0 %vm767_vm2, %v1946_v44  ;;  %v2142_v31 = vpop.permute.xlu0 %2141 }
 0x43b   : > { %2183 = vmatpush1.bf16.msra.mxu0 %v2046_v26 }
 0x43c   : > { %2296 = vmatprep.subr.bf16.mxu0 %v2272_v59 }
 0x43e   : > { %2187 = vmatmul.mubr.bf16.vlgmr.msra.gmra.mrb[8].mxu0 %v4236_v0 }
 0x43f   : > { %2297 = vmatpush1.bf16.msra.mxu0 %v2269_v62  ;;  %2328 = vmatprep.mubr.bf16.mxu0 %v4482_v47 }
 0x465   : > { %v988_v17 = vpop.xlane.xlu0 %987 }
 0x466   : > { %v989_v48 = vmul.f32 0.00390625, %v988_v17 }
 0x46e   : > { %v376_v55 = vpop.xlane.xlu1 %375 }
 0x46f   : > { %v377_v43 = vmul.f32 0.00390625, %v376_v55 }
 0x471   : > { %v2844_v49 = vpack.i.bf16 %v989_v48, %v377_v43 }
 0x472   : > { %v1607_v29 = vpop.xlane.xlu1 %1606 }
 0x473   : > { %2845 = vrot.lane.b32.xlu1 %v2844_v49, %s3009_s26 }
 0x476   : > { %v371_v35 = vpop.xlane.xlu1 %370 }
 0x477   : > { %v373_v13 = vmul.f32 0.00390625, %v371_v35 }
 0x47a   : > { %v1603_v11 = vpop.xlane.xlu1 %1602 }
 0x47b   : > { %v1604_v49 = vmul.f32 0.00390625, %v1603_v11 }
 0x4e5   : > { %v2846_v15 = vpop.permute.xlu1 %2845 }
 0x4e6   : > { %v2847_v44 = vunpack.i.l.bf16 %v2846_v15  ;;  %v2848_v26 = vunpack.i.h.bf16 %v2846_v15 }
 0x4e8   : > { %v2395_v3 = vsel %vm2394_vm13, %v373_v13, %v2847_v44 }
 0x4fd   : > { %v2229_v2 = vpop.f32.mrb[8].mxu1 }
 0x4fe   : > { %v2230_v50 = vadd.f32 %v2229_v2, %v2142_v31  ;;  %v2231_v22 = vpop.f32.mrb[9].mxu1 }
 0x4ff   : > { %v2232_v16 = vadd.f32 %v2231_v22, %v2142_v31  ;;  %v2233_v57 = vpop.f32.mrb[10].mxu1 }
 0x500   : > { %v2238_v0 = vmax.f32 %v2230_v50, 0.0  ;;  %v2234_v5 = vpop.f32.mrb[11].mxu1 }
 0x501   : > { %v2239_v27 = vmax.f32 %v2232_v16, 0.0 }
 0x502   : > { %v2250_v40 = vpack.c.bf16 %v2238_v0, %v2238_v0 }
 0x503   : > { %v2244_v36 = vadd.f32 %v2239_v27, %v2238_v0  ;;  %v2251_v46 = vpack.c.bf16 %v2239_v27, %v2239_v27  ;;  %v2478_v0 = vld [vmem:[%s4405_s8] sm:$0xff] }
 0x504   : > { %v2266_v47 = vrot.slane %v2250_v40, 4 }
 0x505   : > { %v2267_v39 = vrot.slane %v2251_v46, 4  ;;  %2245 = vadd.xlane.f32.xlu0 %v2244_v36  ;;  %v4489_v46 = vmov 1  }
 0x506   : > { %v2287_v25 = vsel %vm767_vm2, %v4169_v28, %v2266_v47  ;;  %v2292_v28 = vld [vmem:[%s4403_s6] sm:$0xf] }
 0x507   : > { %v2290_v21 = vsel %vm767_vm2, %v4165_v38, %v2267_v39 }
 0x508   : > { %2339 = vmatprep.subr.bf16.mxu1 %v2290_v21 }
 0x509   : > { %2340 = vmatpush1.bf16.msra.mxu1 %v2287_v25  ;;  %983 = vadd.xlane.f32.xlu0 %v4488_v51 }
 0x50a   : > { %2755 = vmatprep.subr.mxu1 %v3020_v12 }
 0x50c   : > { %2713 = vmatmul.mubr.msk.bf16.vlgmr.msra.gmra.mrb[12].mxu1 %vm1511_vm10, %v2292_v28 }
 0x50d   : > { %2757 = vmatprep.mubr.msk.f32.mxu1 %vm3019_vm12, %v3020_v12 }
 0x511   : > { %v2188_v18 = vpop.f32.mrb[8].mxu0 }
 0x512   : > { %v2189_v4 = vadd.f32 %v2188_v18, %v2142_v31  ;;  %v2190_v45 = vpop.f32.mrb[9].mxu0 }
 0x513   : > { %v2191_v34 = vadd.f32 %v2190_v45, %v2142_v31  ;;  %v2192_v56 = vpop.f32.mrb[10].mxu0 }
 0x514   : > { %v2236_v58 = vmax.f32 %v2189_v4, 0.0  ;;  %v2193_v1 = vpop.f32.mrb[11].mxu0 }
 0x515   : > { %v2237_v60 = vmax.f32 %v2191_v34, 0.0 }
 0x516   : > { %v2248_v14 = vpack.c.bf16 %v2236_v58, %v2236_v58 }
 0x517   : > { %v2240_v30 = vadd.f32 %v2237_v60, %v2236_v58  ;;  %v2249_v52 = vpack.c.bf16 %v2237_v60, %v2237_v60 }
 0x518   : > { %v2264_v32 = vrot.slane %v2248_v14, 4  ;;  %v3022_v14 = vmov 3  }
 0x519   : > { %v2265_v38 = vrot.slane %v2249_v52, 4  ;;  %2241 = vadd.xlane.f32.xlu0 %v2240_v30 }
 0x51a   : > { %v2281_v6 = vsel %vm767_vm2, %v4298_v61, %v2264_v32  ;;  %v2399_v61 = vld [vmem:[%s4404_s7] sm:$0x3] }
 0x51b   : > { %v2284_v7 = vsel %vm767_vm2, %v4284_v19, %v2265_v38  ;;  %v1608_v19 = vmul.f32 0.00390625, %v1607_v29  ;;  %2402 = vperm.xlu1 %2854, %v2399_v61  }
 0x51c   : > { %2298 = vmatprep.subr.bf16.mxu0 %v2284_v7 }
 0x51d   : > { %2299 = vmatpush1.bf16.msra.mxu0 %v2281_v6 }
 0x51e   : > { %2760 = vmatprep.subr.bf16.mxu0 %v3018_v10 }
 0x51f   : > { %2855 = vset.pattern.permute.xlu1 %v3017_v37 }
 0x520   : > { %2712 = vmatmul.mubr.msk.bf16.vlgmr.msra.gmra.mrb[12].mxu0 %vm1511_vm10, %v2292_v28  ;;  %2481 = vperm.xlu1 %2855, %v2478_v0  }
 0x521   : > { %2752 = vmatprep.mubr.msk.f32.mxu0 %vm3019_vm12, %v3020_v12 }
 0x524   : > { %2857 = vset.pattern.permute.xlu1 %v4489_v46 }
 0x592   : > { %v2246_v9 = vpop.xlane.xlu0 %2245 }
 0x593   : > { %v2247_v20 = vmul.f32 0.00390625, %v2246_v9 }
 0x595   : > { %v2849_v41 = vpack.i.bf16 %v2247_v20, %v1608_v19 }
 0x596   : > { %v984_v53 = vpop.xlane.xlu0 %983 }
 0x597   : > { %v985_v23 = vmul.f32 0.00390625, %v984_v53  ;;  %2850 = vrot.lane.b32.xlu0 %v2849_v41, %s3009_s26 }
 0x599   : > { %v2396_v59 = vsel %vm2394_vm13, %v985_v23, %v2848_v26 }
 0x59a   : > { %v2761_v54 = vpack.c.bf16 %v2396_v59, %v2395_v3  ;;  %v2403_v47 = vpop.permute.xlu1 %2402 }
 0x59c   : > { %2762 = vmatpush3.bf16.msra.mxu0 %v2761_v54 }
 0x59d   : > { %2763 = vmatprep.subr.bf16.mxu0 %v3018_v10 }
 0x59f   : > { %v2482_v18 = vpop.permute.xlu1 %2481 }
 0x5a6   : > { %v2242_v48 = vpop.xlane.xlu0 %2241 }
 0x5a7   : > { %v2243_v2 = vmul.f32 0.00390625, %v2242_v48 }
 0x5df   : > { %v2371_v5 = vpop.f32.mrb[12].mxu1 }
 0x5e0   : > { %v2373_v27 = vpop.f32.mrb[13].mxu1 }
 0x5e1   : > { %v2375_v40 = vpop.f32.mrb[14].mxu1 }
 0x5e2   : > { %v2376_v36 = vpop.f32.mrb[15].mxu1 }
 0x5f3   : > { %v2330_v62 = vpop.f32.mrb[12].mxu0 }
 0x5f4   : > { %v2332_v31 = vpop.f32.mrb[13].mxu0 }
 0x5f5   : > { %v2334_v17 = vpop.f32.mrb[14].mxu0 }
 0x5f6   : > { %v2335_v55 = vpop.f32.mrb[15].mxu0 }
 0x609   : > { %v2851_v43 = vpop.permute.xlu0 %2850 }
 0x60a   : > { %v2853_v50 = vunpack.i.h.bf16 %v2851_v43  ;;  %v2852_v22 = vunpack.i.l.bf16 %v2851_v43 }
 0x60c   : > { %v2398_v16 = vsel %vm2394_vm13, %v2243_v2, %v2853_v50  ;;  %v2397_v37 = vsel %vm2394_vm13, %v1604_v49, %v2852_v22 }
 0x60d   : > { %v2764_v57 = vpack.c.bf16 %v2398_v16, %v2397_v37 }
 0x60f   : > { %2765 = vmatpush3.bf16.msra.mxu0 %v2764_v57 }
 0x612   : > { %2753 = vmatmul.mubr.msk.f32.vlgmr.msra.gmra.mrb[16].mxu0 %vm1511_vm10, %v2399_v61 }
 0x6e5   : > { %v2473_v39 = vpop.f32.mrb[16].mxu0 }
 0x6e6   : > { %v2474_v21 = vadd.f32 %v2473_v39, %v2403_v47  ;;  %v2754_v25 = vpop.f32.mrb[17].mxu0 }
 0x6e8   : > { %v2477_v51 = vmax.f32 %v2474_v21, 0.0 }
 0x6ea   : > { %2756 = vmatpush3.msk.msra.mxu1 %vm2487_vm14, %v2477_v51 }
 0x6eb   : > { %2758 = vmatmul.mubr.msk.f32.vlgmr.msra.gmra.mrb[16].mxu1 %vm2484_vm15, %v2478_v0 }
 0x7be   : > { %v2557_v4 = vpop.f32.mrb[16].mxu1 }
 0x7bf   : > { %v2558_v45 = vadd.f32 %v2557_v4, %v2482_v18  ;;  %v2759_v34 = vpop.f32.mrb[17].mxu1 }
 0x7c1   : > { %v2717_v56 = vmul.f32 -1.442695, %v2558_v45 }
 0x7c3   : > { %2864 = vpow2.f32 %v2717_v56 }
 0x7cd   : > { %v2865_v58 = vpop.eup %2864 }
 0x7ce   : > { %v2564_v1 = vadd.f32 1.0, %v2865_v58 }
 0x7d0   : > { %2866 = vrcp.f32 %v2564_v1 }
 0x7da   : > { %v2867_v60 = vpop.eup %2866 }
 0x7db   : > { %2575 = vperm.xlu1 %2857, %v2867_v60   ;;  %2569 = vperm.xlu0 %2856, %v2867_v60  }
 0x7df   : > { %2858 = vset.pattern.permute.xlu1 %v3022_v14  ;;  %2859 = vset.pattern.permute.xlu0 %v3022_v14 }
 0x7e0   : > { %2581 = vperm.xlu1 %2858, %v2478_v0  }
 0x85a   : > { %v2576_v30 = vpop.permute.xlu1 %2575  ;;  %v2570_v52 = vpop.permute.xlu0 %2569 }
 0x85b   : > { %v2578_v32 = vmul.f32 %v2576_v30, %v2371_v5  ;;  %v2579_v38 = vmul.f32 %v2576_v30, %v2373_v27  ;;  %v2572_v28 = vmul.f32 %v2570_v52, %v2330_v62  ;;  %v2573_v7 = vmul.f32 %v2570_v52, %v2332_v31 }
 0x85f   : > { %v2582_v6 = vpop.permute.xlu1 %2581 }
 0x860   : > { %v2584_v10 = vadd.f32 %v2582_v6, %v2572_v28  ;;  %v2585_v29 = vadd.f32 %v2582_v6, %v2573_v7  ;;  %v2586_v35 = vadd.f32 %v2582_v6, %v2578_v32  ;;  %v2587_v11 = vadd.f32 %v2582_v6, %v2579_v38 }
 0x862   : > { %v2588_v12 = vadd.f32 %v4037_v24, %v2584_v10  ;;  %v2589_v15 = vadd.f32 %v4040_v42, %v2585_v29  ;;  %v2590_v9 = vadd.f32 %v4029_v63, %v2586_v35  ;;  %v2591_v19 = vadd.f32 %v4032_v33, %v2587_v11 }
 0x864   : > { %2592 = vst [vmem:[%s363_s19] sm:$0xff] %v2588_v12  ;;  %2593 = vst [vmem:[%s363_s19 + $0x8] sm:$0xff] %v2589_v15 }
 0x865   : > { %2594 = vst [vmem:[%s363_s19 + $0x10] sm:$0xff] %v2590_v9  ;;  %2595 = vst [vmem:[%s363_s19 + $0x18] sm:$0xff] %v2591_v19 }
 0x866   : > { %2944 = shalt.err (!%p2941_p7)
}
 0x867   : > { %s2945_s25 = scalar_lea.hbm %s4353_s13, 512  ;;  %s2949_s24 = scalar_lea.hbm %s4406_s9, 1024 }
 0x868   : > { %p2946_p9 = scmp.ne.s32.totalorder %s4353_s13, %s2945_s25  ;;  %p2950_p0 = scmp.lt.u32.totalorder %s4353_s13, %s4406_s9 }
 0x869   : > { %p2951_p11 = scmp.lt.u32.totalorder %s2949_s24, %s2945_s25  ;;  %p2953_p4 = scmp.lt.u32.totalorder %s2945_s25, %s4353_s13 }
 0x86a   : > { %p2947_p2 = pnand %p2946_p9, %p3165_p12 }
 0x86b   : > { %p2952_p1 = por %p2951_p11, %p2950_p0 }
 0x86c   : > { %p2948_p5 = pneg %p2947_p2 }
 0x86d   : > { %p2954_p6 = por %p2953_p4, %p2952_p1 }
 0x86f   : > { %p2955_p8 = pnand %p2954_p6, %p2948_p5 }
 0x871   : > { %2958 = shalt.err (!%p2955_p8)
}
 0x872   : > { %2772 = dma.vmem_to_hbm [thread:$0]  (%p3165_p12), %s4355_s16, 512, %s4353_s13, %s2597_s27  }
 0x873 PF: > { %s4490_s21 = sld [smem:[#allocation12_spill]]  ;;  %s2623_s17 = sand.u32 1, %s2989_s30  }
 0x874   : > { %p4492_p13 = scmp.ge.s32.totalorder %s3001_s12, 2  ;;  %s2624_s18 = scalar_lea.sflag [#allocation5], %s2623_s17 }
 0x879   : > { %p4491_p10 = scmp.ne.s32.totalorder %s4490_s21, 0 }
 0x87b   : > { %p2783_p3 = pnand %p4492_p13, %p4491_p10 }
 0x87d   : > { %2984 = dma.done.wait (!%p2783_p3), %s2624_s18, 512  }
 0x87e   : > { %2986 = vsyncadd (!%p2783_p3), %s2624_s18, 4294966784  ;;  %s4493_s12 = sld [smem:[#allocation13_spill]]  ;;  %s4494_s30 = smov %s2993_s10 }
 0x87f   : > { %s4495_s10 = smov %s2997_s11  ;;  %s4496_s11 = smov %s3161_s28 }
 0x884   : > { %p23_p7 = scmp.ge.s32.totalorder %s4493_s12, 4  }
 0x886   :  { %25 = sbr.rel (!%p23_p7) target bundleno = 6 (0x6), region = 112 }
 0x88d   :  { %2629 = vsyncpa [#allocation4], 1 }
 0x88e   :  { %2631 = vsyncpa [#allocation4 + $0x1], 1 }
 0x88f   :  { %2632 = vsyncpa [#allocation7], 1 }
 0x890   :  { %2633 = vsyncpa [#allocation5], 1 }
 0x891   :  { %2635 = vsyncpa [#allocation5 + $0x1], 1 }

</bundles_post_ra>
